<compile_context>
chip_gen: v7x
topology: tpu7x:2x2x1
jax: 0.10.0
libtpu: 0.0.40
codegen_flags: <defaults>
</compile_context>

<pallas_src>
import functools

import jax
import jax.numpy as jnp
from jax.experimental import pallas as pl
from jax.experimental.pallas import tpu as pltpu


def _round_up(x: int, n: int) -> int:
    return ((x + n - 1) // n) * n


def memn2n_kernel(m_ref, u0_ref, ht_ref, cand_t_ref, out_ref, u_sc, *,
                  max_hops: int, memory_size: int):
    # Hop recurrence: run once per batch tile (candidate-tile index j == 0);
    # result is cached in VMEM scratch and reused for every candidate tile.
    @pl.when(pl.program_id(1) == 0)
    def _():
        m = m_ref[...].astype(jnp.float32)   # (TB, MEM_P, E_P), bf16 in HBM/VMEM
        u = u0_ref[...]                      # (TB, E_P) f32
        ht = ht_ref[...]                     # (E_P, E_P) bf16, H pre-transposed

        tb, mem_p, _ = m.shape
        # Mask for padded memory slots -- hoisted out of the unrolled hop loop.
        slot_ids = jax.lax.broadcasted_iota(jnp.int32, (tb, mem_p), 1)
        valid = slot_ids < memory_size
        neg_big = jnp.float32(-1e30)

        for _ in range(max_hops):
            # scores[b,i] = sum_e u[b,e] * m[b,i,e]  -- VPU mul + lane reduce
            scores = jnp.sum(m * u[:, None, :], axis=-1)          # (TB, MEM_P)
            scores = jnp.where(valid, scores, neg_big)

            # softmax over memory slots (dim=1 in the PyTorch module), exact divide
            smax = jnp.max(scores, axis=1, keepdims=True)
            e = jnp.exp(scores - smax)
            prob = e / jnp.sum(e, axis=1, keepdims=True)

            # o[b,e] = sum_i prob[b,i] * m[b,i,e]   -- VPU mul + sublane reduce
            o = jnp.sum(prob[:, :, None] * m, axis=1)             # (TB, E_P)

            # u_{k+1} = H(u_k) + o_k == u_k @ H^T + o_k   (MXU GEMM, bf16 in / f32 acc)
            u = jnp.dot(u.astype(jnp.bfloat16), ht,
                        preferred_element_type=jnp.float32) + o

        u_sc[...] = u

    # logits tile = u @ candidates^T  (streamed candidate tile, MXU GEMM)
    out_ref[...] = jnp.dot(u_sc[...].astype(jnp.bfloat16), cand_t_ref[...],
                           preferred_element_type=jnp.float32)


def prepare_memn2n_weights(W, H, candidates):
    """One-time (per parameter update) weight-side padding / transposition."""
    embed = H.shape[0]
    n_cand = candidates.shape[0]
    e_p = _round_up(embed, 128)
    nc_p = _round_up(n_cand, 128)

    # candidate embeddings: padding_idx=0 rows of W are zero, so plain sum is exact
    cand_emb = jnp.sum(jnp.take(W, candidates, axis=0), axis=1)       # (n_cand, E)

    ht_p = jnp.pad(H.T.astype(jnp.bfloat16),
                   ((0, e_p - embed), (0, e_p - embed)))              # (E_P, E_P)
    cand_t_p = jnp.pad(cand_emb.T.astype(jnp.bfloat16),
                       ((0, e_p - embed), (0, nc_p - n_cand)))        # (E_P, NC_P)
    return ht_p, cand_t_p


def memn2n_forward(story, query, A, ht_p, cand_t_p, n_cand, *, max_hops: int):
    bs, memory_size, _ = story.shape
    embed = A.shape[1]
    e_p, nc_p = cand_t_p.shape

    # ---- XLA glue: embedding gathers + sentence sums (padding_idx=0 rows are 0) --
    u0 = jnp.sum(jnp.take(A, query, axis=0), axis=1)                  # (bs, E)
    m = jnp.sum(jnp.take(A, story, axis=0), axis=2)                   # (bs, mem, E)

    # ---- padding / tiling choices ----
    bs_p = _round_up(bs, 8)
    # Lane-pad the memory axis only when it is big enough for the softmax/readout
    # to matter; for tiny memories a sublane pad (16, bf16-friendly) is enough.
    mem_p = _round_up(memory_size, 128 if memory_size >= 64 else 16)

    # Batch tile: as large as possible (MXU row fill), multiple of 8, divides bs_p.
    TB = min(bs_p, 128)
    while bs_p % TB:
        TB -= 8
    # v7x: keep >= 2 grid steps on the parallel axis when the batch allows.
    if bs_p // TB == 1 and bs_p >= 16 and (bs_p // 2) % 8 == 0:
        TB = bs_p // 2
    # Candidate tile: lane-dense multiple of 128 (256 when it divides evenly).
    TN = 256 if nc_p % 256 == 0 else 128

    m_p = jnp.pad(m.astype(jnp.bfloat16),
                  ((0, bs_p - bs), (0, mem_p - memory_size), (0, e_p - embed)))
    u0_p = jnp.pad(u0.astype(jnp.float32), ((0, bs_p - bs), (0, e_p - embed)))

    # ---- VMEM budget (double-buffered blocks + scratch + f32 copy of m tile) ----
    blk_bytes = 2 * (TB * mem_p * e_p * 2      # m block (bf16)
                     + TB * e_p * 4            # u0 block (f32)
                     + e_p * e_p * 2           # H^T block (bf16)
                     + e_p * TN * 2            # cand^T block (bf16)
                     + TB * TN * 4)            # output block (f32)
    blk_bytes += TB * e_p * 4 + TB * mem_p * e_p * 4   # scratch + in-kernel f32 m
    vmem_limit = int(min(max(2 * blk_bytes, 32 * 2**20), 64 * 2**20))

    cost = pl.CostEstimate(
        flops=2 * bs_p * (max_hops * (2 * mem_p * e_p + e_p * e_p) + e_p * nc_p),
        transcendentals=bs_p * max_hops * mem_p,
        bytes_accessed=int(m_p.size * 2 + u0_p.size * 4 + ht_p.size * 2
                           + cand_t_p.size * 2 + bs_p * nc_p * 4),
    )

    kernel = functools.partial(memn2n_kernel, max_hops=max_hops,
                               memory_size=memory_size)

    logits_p = pl.pallas_call(
        kernel,
        out_shape=jax.ShapeDtypeStruct((bs_p, nc_p), jnp.float32),
        grid=(bs_p // TB, nc_p // TN),
        in_specs=[
            pl.BlockSpec((TB, mem_p, e_p), lambda b, j: (b, 0, 0)),
            pl.BlockSpec((TB, e_p), lambda b, j: (b, 0)),
            pl.BlockSpec((e_p, e_p), lambda b, j: (0, 0)),
            pl.BlockSpec((e_p, TN), lambda b, j: (0, j)),
        ],
        out_specs=pl.BlockSpec((TB, TN), lambda b, j: (b, j)),
        scratch_shapes=[pltpu.VMEM((TB, e_p), jnp.float32)],
        compiler_params=pltpu.CompilerParams(
            dimension_semantics=("parallel", "arbitrary"),
            vmem_limit_bytes=vmem_limit),
        cost_estimate=cost,
    )(m_p, u0_p, ht_p, cand_t_p)

    return logits_p[:bs, :n_cand]


if __name__ == "__main__":
    # Small shapes consistent with the module's forward.
    vocab_size = 24
    memory_size = 8
    sent_size = 6
    embed_size = 32
    max_hops = 3
    n_cand = 16
    bs = 2

    key = jax.random.PRNGKey(0)
    kA, kW, kH, ks, kq, kc = jax.random.split(key, 6)

    # Embedding weights: normal(0, 0.1), padding_idx=0 row forced to zero.
    A = (jax.random.normal(kA, (vocab_size, embed_size), jnp.float32) * 0.1
         ).at[0].set(0.0)
    W = (jax.random.normal(kW, (vocab_size, embed_size), jnp.float32) * 0.1
         ).at[0].set(0.0)
    # nn.Linear(embed, embed, bias=False) default init: U(-1/sqrt(E), 1/sqrt(E))
    bound = float(embed_size) ** -0.5
    H = jax.random.uniform(kH, (embed_size, embed_size), jnp.float32,
                           minval=-bound, maxval=bound)

    # Integer token inputs (0 acts as padding).
    story = jax.random.randint(ks, (bs, memory_size, sent_size), 0, vocab_size,
                               dtype=jnp.int32)
    query = jax.random.randint(kq, (bs, sent_size), 0, vocab_size, dtype=jnp.int32)
    candidates = jax.random.randint(kc, (n_cand, sent_size), 0, vocab_size,
                                    dtype=jnp.int32)

    # Weight-side padding/transposes: precomputed once, reused across forwards.
    ht_p, cand_t_p = prepare_memn2n_weights(W, H, candidates)

    logits = memn2n_forward(story, query, A, ht_p, cand_t_p, n_cand,
                            max_hops=max_hops)
    jax.block_until_ready(logits)

    # Pure-JAX f32 reference of the same forward semantics.
    def ref_forward(story, query, candidates, A, W, H):
        u = [jnp.sum(jnp.take(A, query, axis=0), axis=1)]
        m = jnp.sum(jnp.take(A, story, axis=0), axis=2)
        for _ in range(max_hops):
            prob = jax.nn.softmax(jnp.sum(m * u[-1][:, None, :], axis=2), axis=1)
            o_k = jnp.sum(m * prob[:, :, None], axis=1)
            u.append(u[-1] @ H.T + o_k)
        cand = jnp.sum(jnp.take(W, candidates, axis=0), axis=1)
        return u[-1] @ cand.T

    ref = ref_forward(story, query, candidates, A, W, H)
    assert logits.shape == (bs, n_cand)
    # Tolerance accounts for bf16 storage of m / H^T / cand^T (f32 accumulation).
    assert jnp.allclose(logits, ref, atol=2e-2, rtol=2e-2), (
        float(jnp.max(jnp.abs(logits - ref))))

    print("KERNEL_OK")
</pallas_src>

<mosaic_0001>
module attributes {stable_mosaic.version = 11 : i64} {
  func.func @memn2n_kernel(%arg0: i32, %arg1: i32, %arg2: memref<8x16x128xbf16, #tpu.memory_space<vmem>>, %arg3: memref<8x128xf32, #tpu.memory_space<vmem>>, %arg4: memref<128x128xbf16, #tpu.memory_space<vmem>>, %arg5: memref<128x128xbf16, #tpu.memory_space<vmem>>, %arg6: memref<8x128xf32, #tpu.memory_space<vmem>>, %arg7: memref<8x128xf32, #tpu.memory_space<vmem>>) attributes {dimension_semantics = [#tpu.dimension_semantics<parallel>, #tpu.dimension_semantics<arbitrary>], iteration_bounds = array<i64: 1, 1>, scalar_prefetch = 0 : i64, scratch_operands = 1 : i64, tpu.core_type = #tpu.core_type<tc>, window_params = [{transform_indices = @transform_0, window_bounds = array<i64: 8, 16, 128>}, {transform_indices = @transform_1, window_bounds = array<i64: 8, 128>}, {pipeline_mode = #tpu.pipeline_mode<synchronous>, transform_indices = @transform_2, window_bounds = array<i64: 128, 128>}, {transform_indices = @transform_3, window_bounds = array<i64: 128, 128>}, {transform_indices = @transform_4, window_bounds = array<i64: 8, 128>}]} {
    %c0_i32 = arith.constant 0 : i32
    %0 = arith.cmpi eq, %arg1, %c0_i32 : i32
    %1 = arith.extui %0 : i1 to i32
    %c0_i32_0 = arith.constant 0 : i32
    %2 = arith.cmpi ne, %1, %c0_i32_0 : i32
    scf.if %2 {
      %c0_6 = arith.constant 0 : index
      %c0_7 = arith.constant 0 : index
      %c0_8 = arith.constant 0 : index
      %8 = vector.load %arg2[%c0_6, %c0_7, %c0_8] : memref<8x16x128xbf16, #tpu.memory_space<vmem>>, vector<8x16x128xbf16>
      %9 = arith.extf %8 : vector<8x16x128xbf16> to vector<8x16x128xf32>
      %c0_9 = arith.constant 0 : index
      %c0_10 = arith.constant 0 : index
      %10 = vector.load %arg3[%c0_9, %c0_10] : memref<8x128xf32, #tpu.memory_space<vmem>>, vector<8x128xf32>
      %c0_11 = arith.constant 0 : index
      %c0_12 = arith.constant 0 : index
      %11 = vector.load %arg4[%c0_11, %c0_12] : memref<128x128xbf16, #tpu.memory_space<vmem>>, vector<128x128xbf16>
      %12 = tpu.iota {dimensions = array<i32: 1>} : vector<8x16xi32>
      %c8_i32 = arith.constant 8 : i32
      %13 = vector.broadcast %c8_i32 : i32 to vector<8x16xi32>
      %14 = arith.cmpi slt, %12, %13 : vector<8x16xi32>
      %15 = vector.shape_cast %10 : vector<8x128xf32> to vector<8x1x128xf32>
      %16 = vector.broadcast %15 : vector<8x1x128xf32> to vector<8x16x128xf32>
      %17 = arith.mulf %9, %16 : vector<8x16x128xf32>
      %cst_13 = arith.constant dense<0.000000e+00> : vector<8x16xf32>
      %18 = vector.multi_reduction <add>, %17, %cst_13 [2] : vector<8x16x128xf32> to vector<8x16xf32>
      %cst_14 = arith.constant -1.000000e+30 : f32
      %19 = vector.broadcast %cst_14 : f32 to vector<8x16xf32>
      %20 = arith.select %14, %18, %19 : vector<8x16xi1>, vector<8x16xf32>
      %cst_15 = arith.constant dense<0xFF800000> : vector<8xf32>
      %21 = vector.multi_reduction <maximumf>, %20, %cst_15 [1] : vector<8x16xf32> to vector<8xf32>
      %22 = vector.shape_cast %21 : vector<8xf32> to vector<8x1xf32>
      %23 = vector.broadcast %22 : vector<8x1xf32> to vector<8x16xf32>
      %24 = arith.subf %20, %23 : vector<8x16xf32>
      %25 = math.exp %24 : vector<8x16xf32>
      %cst_16 = arith.constant dense<0.000000e+00> : vector<8xf32>
      %26 = vector.multi_reduction <add>, %25, %cst_16 [1] : vector<8x16xf32> to vector<8xf32>
      %27 = vector.shape_cast %26 : vector<8xf32> to vector<8x1xf32>
      %28 = vector.broadcast %27 : vector<8x1xf32> to vector<8x16xf32>
      %29 = arith.divf %25, %28 : vector<8x16xf32>
      %30 = vector.shape_cast %29 : vector<8x16xf32> to vector<8x16x1xf32>
      %31 = vector.broadcast %30 : vector<8x16x1xf32> to vector<8x16x128xf32>
      %32 = arith.mulf %31, %9 : vector<8x16x128xf32>
      %cst_17 = arith.constant dense<0.000000e+00> : vector<8x128xf32>
      %33 = vector.multi_reduction <add>, %32, %cst_17 [1] : vector<8x16x128xf32> to vector<8x128xf32>
      %34 = arith.truncf %10 : vector<8x128xf32> to vector<8x128xbf16>
      %cst_18 = arith.constant dense<0.000000e+00> : vector<8x128xf32>
      %35 = tpu.matmul %34, %11, %cst_18 {dimension_numbers = #tpu.dot_dimension_numbers<[1], [0], [0], [1], [0, 0, 1, 1], [], []>} : vector<8x128xbf16>, vector<128x128xbf16>, vector<8x128xf32> -> vector<8x128xf32>
      %36 = arith.addf %35, %33 : vector<8x128xf32>
      %37 = vector.shape_cast %36 : vector<8x128xf32> to vector<8x1x128xf32>
      %38 = vector.broadcast %37 : vector<8x1x128xf32> to vector<8x16x128xf32>
      %39 = arith.mulf %9, %38 : vector<8x16x128xf32>
      %cst_19 = arith.constant dense<0.000000e+00> : vector<8x16xf32>
      %40 = vector.multi_reduction <add>, %39, %cst_19 [2] : vector<8x16x128xf32> to vector<8x16xf32>
      %cst_20 = arith.constant -1.000000e+30 : f32
      %41 = vector.broadcast %cst_20 : f32 to vector<8x16xf32>
      %42 = arith.select %14, %40, %41 : vector<8x16xi1>, vector<8x16xf32>
      %cst_21 = arith.constant dense<0xFF800000> : vector<8xf32>
      %43 = vector.multi_reduction <maximumf>, %42, %cst_21 [1] : vector<8x16xf32> to vector<8xf32>
      %44 = vector.shape_cast %43 : vector<8xf32> to vector<8x1xf32>
      %45 = vector.broadcast %44 : vector<8x1xf32> to vector<8x16xf32>
      %46 = arith.subf %42, %45 : vector<8x16xf32>
      %47 = math.exp %46 : vector<8x16xf32>
      %cst_22 = arith.constant dense<0.000000e+00> : vector<8xf32>
      %48 = vector.multi_reduction <add>, %47, %cst_22 [1] : vector<8x16xf32> to vector<8xf32>
      %49 = vector.shape_cast %48 : vector<8xf32> to vector<8x1xf32>
      %50 = vector.broadcast %49 : vector<8x1xf32> to vector<8x16xf32>
      %51 = arith.divf %47, %50 : vector<8x16xf32>
      %52 = vector.shape_cast %51 : vector<8x16xf32> to vector<8x16x1xf32>
      %53 = vector.broadcast %52 : vector<8x16x1xf32> to vector<8x16x128xf32>
      %54 = arith.mulf %53, %9 : vector<8x16x128xf32>
      %cst_23 = arith.constant dense<0.000000e+00> : vector<8x128xf32>
      %55 = vector.multi_reduction <add>, %54, %cst_23 [1] : vector<8x16x128xf32> to vector<8x128xf32>
      %56 = arith.truncf %36 : vector<8x128xf32> to vector<8x128xbf16>
      %cst_24 = arith.constant dense<0.000000e+00> : vector<8x128xf32>
      %57 = tpu.matmul %56, %11, %cst_24 {dimension_numbers = #tpu.dot_dimension_numbers<[1], [0], [0], [1], [0, 0, 1, 1], [], []>} : vector<8x128xbf16>, vector<128x128xbf16>, vector<8x128xf32> -> vector<8x128xf32>
      %58 = arith.addf %57, %55 : vector<8x128xf32>
      %59 = vector.shape_cast %58 : vector<8x128xf32> to vector<8x1x128xf32>
      %60 = vector.broadcast %59 : vector<8x1x128xf32> to vector<8x16x128xf32>
      %61 = arith.mulf %9, %60 : vector<8x16x128xf32>
      %cst_25 = arith.constant dense<0.000000e+00> : vector<8x16xf32>
      %62 = vector.multi_reduction <add>, %61, %cst_25 [2] : vector<8x16x128xf32> to vector<8x16xf32>
      %cst_26 = arith.constant -1.000000e+30 : f32
      %63 = vector.broadcast %cst_26 : f32 to vector<8x16xf32>
      %64 = arith.select %14, %62, %63 : vector<8x16xi1>, vector<8x16xf32>
      %cst_27 = arith.constant dense<0xFF800000> : vector<8xf32>
      %65 = vector.multi_reduction <maximumf>, %64, %cst_27 [1] : vector<8x16xf32> to vector<8xf32>
      %66 = vector.shape_cast %65 : vector<8xf32> to vector<8x1xf32>
      %67 = vector.broadcast %66 : vector<8x1xf32> to vector<8x16xf32>
      %68 = arith.subf %64, %67 : vector<8x16xf32>
      %69 = math.exp %68 : vector<8x16xf32>
      %cst_28 = arith.constant dense<0.000000e+00> : vector<8xf32>
      %70 = vector.multi_reduction <add>, %69, %cst_28 [1] : vector<8x16xf32> to vector<8xf32>
      %71 = vector.shape_cast %70 : vector<8xf32> to vector<8x1xf32>
      %72 = vector.broadcast %71 : vector<8x1xf32> to vector<8x16xf32>
      %73 = arith.divf %69, %72 : vector<8x16xf32>
      %74 = vector.shape_cast %73 : vector<8x16xf32> to vector<8x16x1xf32>
      %75 = vector.broadcast %74 : vector<8x16x1xf32> to vector<8x16x128xf32>
      %76 = arith.mulf %75, %9 : vector<8x16x128xf32>
      %cst_29 = arith.constant dense<0.000000e+00> : vector<8x128xf32>
      %77 = vector.multi_reduction <add>, %76, %cst_29 [1] : vector<8x16x128xf32> to vector<8x128xf32>
      %78 = arith.truncf %58 : vector<8x128xf32> to vector<8x128xbf16>
      %cst_30 = arith.constant dense<0.000000e+00> : vector<8x128xf32>
      %79 = tpu.matmul %78, %11, %cst_30 {dimension_numbers = #tpu.dot_dimension_numbers<[1], [0], [0], [1], [0, 0, 1, 1], [], []>} : vector<8x128xbf16>, vector<128x128xbf16>, vector<8x128xf32> -> vector<8x128xf32>
      %80 = arith.addf %79, %77 : vector<8x128xf32>
      %c0_31 = arith.constant 0 : index
      %c0_32 = arith.constant 0 : index
      %81 = vector.load %arg7[%c0_31, %c0_32] : memref<8x128xf32, #tpu.memory_space<vmem>>, vector<8x128xf32>
      tpu.vector_store %arg7[%c0_31, %c0_32], %80 {strides = array<i32>} : memref<8x128xf32, #tpu.memory_space<vmem>>, vector<8x128xf32>,
    } else {
    }
    %c0 = arith.constant 0 : index
    %c0_1 = arith.constant 0 : index
    %3 = vector.load %arg7[%c0, %c0_1] : memref<8x128xf32, #tpu.memory_space<vmem>>, vector<8x128xf32>
    %4 = arith.truncf %3 : vector<8x128xf32> to vector<8x128xbf16>
    %c0_2 = arith.constant 0 : index
    %c0_3 = arith.constant 0 : index
    %5 = vector.load %arg5[%c0_2, %c0_3] : memref<128x128xbf16, #tpu.memory_space<vmem>>, vector<128x128xbf16>
    %cst = arith.constant dense<0.000000e+00> : vector<8x128xf32>
    %6 = tpu.matmul %4, %5, %cst {dimension_numbers = #tpu.dot_dimension_numbers<[1], [0], [0], [1], [0, 0, 1, 1], [], []>} : vector<8x128xbf16>, vector<128x128xbf16>, vector<8x128xf32> -> vector<8x128xf32>
    %c0_4 = arith.constant 0 : index
    %c0_5 = arith.constant 0 : index
    %7 = vector.load %arg6[%c0_4, %c0_5] : memref<8x128xf32, #tpu.memory_space<vmem>>, vector<8x128xf32>
    tpu.vector_store %arg6[%c0_4, %c0_5], %6 {strides = array<i32>} : memref<8x128xf32, #tpu.memory_space<vmem>>, vector<8x128xf32>,
    return
  }
  func.func @transform_0(%arg0: i32, %arg1: i32) -> (i32, i32, i32) {
    %c0_i32 = arith.constant 0 : i32
    %c0_i32_0 = arith.constant 0 : i32
    %c0_i32_1 = arith.constant 0 : i32
    return %arg0, %c0_i32, %c0_i32_0 : i32, i32, i32
  }
  func.func @transform_1(%arg0: i32, %arg1: i32) -> (i32, i32) {
    %c0_i32 = arith.constant 0 : i32
    %c0_i32_0 = arith.constant 0 : i32
    return %arg0, %c0_i32 : i32, i32
  }
  func.func @transform_2(%arg0: i32, %arg1: i32) -> (i32, i32) {
    %c0_i32 = arith.constant 0 : i32
    %c0_i32_0 = arith.constant 0 : i32
    %c0_i32_1 = arith.constant 0 : i32
    return %c0_i32, %c0_i32_0 : i32, i32
  }
  func.func @transform_3(%arg0: i32, %arg1: i32) -> (i32, i32) {
    %c0_i32 = arith.constant 0 : i32
    %c0_i32_0 = arith.constant 0 : i32
    return %c0_i32, %arg1 : i32, i32
  }
  func.func @transform_4(%arg0: i32, %arg1: i32) -> (i32, i32) {
    %c0_i32 = arith.constant 0 : i32
    return %arg0, %arg1 : i32, i32
  }
}

</mosaic_0001>

<bundles_post_ra>
// kernel: tpu_custom_call.1
= control target key start
LH: loop header
LB: loop body
LE: loop exit
PB: predicated region body
PF: predicated region fallthrough
CT: control target
= control target key end

     0   :  { %9 = vsyncpa [#allocation4], 0  ;;  %s2568_s0 = inlined_call_operand.hbm [shape: bf16[8,16,128], index: 0, kind: input, shape index: {}]   ;;  %s2569_s1 = inlined_call_operand.hbm [shape: f32[8,128], index: 1, kind: input, shape index: {}]   ;;  %s2570_s2 = inlined_call_operand.hbm [shape: bf16[128,128], index: 2, kind: input, shape index: {}]   ;;  %s2571_s3 = inlined_call_operand.hbm [shape: bf16[128,128], index: 3, kind: input, shape index: {}]   ;;  %s2572_s4 = inlined_call_operand.hbm [shape: f32[8,128], index: 4, kind: output, shape index: {}]  }
   0x1   :  { %10 = vsyncpa [#allocation7], 0 }
   0x2   :  { %11 = vsyncpa [#allocation10], 0 }
   0x3   :  { %12 = vsyncpa [#allocation5], 0  ;;  %s2028_s15 = smov [#allocation6]   ;;  %s2029_s17 = smov [#allocation3]  }
   0x4   :  { %s31_s16 = sshll.u32 %s2028_s15, 4  ;;  %s18_s18 = sshll.u32 %s2029_s17, 4  ;;  %s32_s16 = int_to_ptr.vmem [resolvable:$true] %s31_s16  ;;  %s2063_s18 = int_to_ptr.vmem [resolvable:$true] %s18_s18 }
   0x5   :  { %s1910_s21 = scalar_lea.hbm %s2569_s1, 128 }
   0x6   :  { %p1911_p0 = scmp.ne.s32.totalorder %s2569_s1, %s1910_s21  ;;  %p1914_p1 = scmp.lt.u32.totalorder %s1910_s21, %s2569_s1 }
   0x8   :  { %p1916_p2 = pnand %p1914_p1, %p1911_p0 }
   0xa   :  { %1919 = shalt.err (!%p1916_p2)
}
   0xb   :  { %s1920_s26 = scalar_lea.vmem %s32_s16, 128  ;;  %p1925_p4 = scmp.lt.s32.totalorder %s32_s16, %s32_s16 }
   0xc   :  { %p1921_p3 = scmp.ne.s32.totalorder %s32_s16, %s1920_s26  ;;  %p1926_p5 = scmp.lt.s32.totalorder %s1920_s26, %s1920_s26 }
   0xe   :  { %p1927_p6 = por %p1926_p5, %p1925_p4 }
  0x10   :  { %p1928_p7 = pnand %p1927_p6, %p1921_p3 }
  0x12   :  { %1931 = shalt.err (!%p1928_p7)
}
  0x13   :  { %34 = dma.hbm_to_vmem [thread:$0]  %s2569_s1, 128, %s32_s16, [#allocation7]  }
  0x14   :  { %s1932_s5 = scalar_lea.hbm %s2568_s0, 1024 }
  0x15   :  { %p1933_p8 = scmp.ne.s32.totalorder %s2568_s0, %s1932_s5  ;;  %p1936_p9 = scmp.lt.u32.totalorder %s1932_s5, %s2568_s0 }
  0x17   :  { %p1938_p10 = pnand %p1936_p9, %p1933_p8 }
  0x19   :  { %1941 = shalt.err (!%p1938_p10)
}
  0x1a   :  { %s1942_s10 = scalar_lea.vmem %s2063_s18, 1024  ;;  %p1947_p12 = scmp.lt.s32.totalorder %s2063_s18, %s2063_s18 }
  0x1b   :  { %p1943_p11 = scmp.ne.s32.totalorder %s2063_s18, %s1942_s10  ;;  %p1948_p13 = scmp.lt.s32.totalorder %s1942_s10, %s1942_s10 }
  0x1d   :  { %p1949_p0 = por %p1948_p13, %p1947_p12 }
  0x1f   :  { %p1950_p1 = pnand %p1949_p0, %p1943_p11 }
  0x21   :  { %1953 = shalt.err (!%p1950_p1)
}
  0x22   :  { %s2030_s1 = smov 64   ;;  %s2031_s11 = smov 4  }
  0x23   :  { %24 = dma.hbm_to_vmem [thread:$0]  %s2568_s0, 1024, %s2063_s18, [#allocation4], %s2030_s1, %s2030_s1, %s2031_s11  }
  0x24   :  { %s2032_s14 = smov [#allocation8]   ;;  %s2033_s16 = smov [#allocation9]  }
  0x25   :  { %s40_s15 = sshll.u32 %s2032_s14, 4  ;;  %s52_s17 = sshll.u32 %s2033_s16, 4  ;;  %s41_s15 = int_to_ptr.vmem [resolvable:$true] %s40_s15  ;;  %s2097_s17 = int_to_ptr.vmem [resolvable:$true] %s52_s17 }
  0x26   :  { %s1954_s21 = scalar_lea.hbm %s2570_s2, 1024 }
  0x27   :  { %p1955_p2 = scmp.ne.s32.totalorder %s2570_s2, %s1954_s21  ;;  %p1958_p3 = scmp.lt.u32.totalorder %s1954_s21, %s2570_s2 }
  0x29   :  { %p1960_p4 = pnand %p1958_p3, %p1955_p2 }
  0x2b   :  { %1963 = shalt.err (!%p1960_p4)
}
  0x2c   :  { %s1964_s0 = scalar_lea.vmem %s41_s15, 1024  ;;  %p1969_p6 = scmp.lt.s32.totalorder %s41_s15, %s41_s15 }
  0x2d   :  { %p1965_p5 = scmp.ne.s32.totalorder %s41_s15, %s1964_s0  ;;  %p1970_p7 = scmp.lt.s32.totalorder %s1964_s0, %s1964_s0 }
  0x2f   :  { %p1971_p8 = por %p1970_p7, %p1969_p6 }
  0x31   :  { %p1972_p9 = pnand %p1971_p8, %p1965_p5 }
  0x33   :  { %1975 = shalt.err (!%p1972_p9)
}
  0x34   :  { %46 = dma.hbm_to_vmem [thread:$0]  %s2570_s2, 1024, %s41_s15, [#allocation7], %s2030_s1, %s2030_s1, %s2031_s11  }
  0x35   :  { %s1976_s29 = scalar_lea.hbm %s2571_s3, 1024 }
  0x36   :  { %p1977_p10 = scmp.ne.s32.totalorder %s2571_s3, %s1976_s29  ;;  %p1980_p11 = scmp.lt.u32.totalorder %s1976_s29, %s2571_s3 }
  0x38   :  { %p1982_p12 = pnand %p1980_p11, %p1977_p10 }
  0x3a   :  { %1985 = shalt.err (!%p1982_p12)
}
  0x3b   :  { %s1986_s8 = scalar_lea.vmem %s2097_s17, 1024  ;;  %p1991_p0 = scmp.lt.s32.totalorder %s2097_s17, %s2097_s17 }
  0x3c   :  { %p1987_p13 = scmp.ne.s32.totalorder %s2097_s17, %s1986_s8  ;;  %p1992_p1 = scmp.lt.s32.totalorder %s1986_s8, %s1986_s8 }
  0x3e   :  { %p1993_p2 = por %p1992_p1, %p1991_p0 }
  0x40   :  { %p1994_p3 = pnand %p1993_p2, %p1987_p13 }
  0x42   :  { %1997 = shalt.err (!%p1994_p3)
}
  0x43   :  { %58 = dma.hbm_to_vmem [thread:$0]  %s2571_s3, 1024, %s2097_s17, [#allocation10], %s2030_s1, %s2030_s1, %s2031_s11  }
  0x44   :  { %2020 = dma.done.wait [#allocation4], 1024  }
  0x45   :  { %2021 = vsyncadd [#allocation4], 4294966272 }
  0x46   :  { %2022 = dma.done.wait [#allocation7], 1152  }
  0x47   :  { %2023 = vsyncadd [#allocation7], 4294966144 }
  0x48   :  { %2024 = dma.done.wait [#allocation10], 1024  }
  0x49   :  { %2025 = vsyncadd [#allocation10], 4294966272  ;;  %v125_v0 = vlaneseq  ;;  %v2034_v1 = vmov 1966171168   ;;  %v1717_v6 = vld [vmem:[#allocation3] sm:$0xff]   ;;  %v1748_v10 = vld [vmem:[#allocation3 + $0x8] sm:$0xff]  }
  0x4a   :  { %v131_v2 = vunpack.c.l.s4 %v2034_v1  ;;  %v2140_v7 = vld [vmem:[#allocation6] sm:$0xff]  ;;  %v2147_v11 = vunpack.c.l.bf16 %v1717_v6  ;;  %v1749_v14 = vld [vmem:[#allocation3 + $0x10] sm:$0xff]   ;;  %v2152_v16 = vunpack.c.l.bf16 %v1748_v10  ;;  %v2154_v17 = vunpack.c.h.bf16 %v1717_v6  ;;  %v1750_v38 = vld [vmem:[#allocation3 + $0x18] sm:$0xff]   ;;  %s2037_s3 = smov [#allocation11]  }
  0x4b   :  { %v2135_v3 = vshrl.u32 %v125_v0, 7  ;;  %v129_v15 = vcombine.high %v2140_v7, %v2140_v7  ;;  %v2161_v24 = vunpack.c.h.bf16 %v1748_v10  ;;  %v1751_v25 = vld [vmem:[#allocation3 + $0x20] sm:$0xff]   ;;  %v2163_v26 = vunpack.c.l.bf16 %v1749_v14  ;;  %v1752_v45 = vld [vmem:[#allocation3 + $0x28] sm:$0xff]   ;;  %v1753_v52 = vld [vmem:[#allocation3 + $0x30] sm:$0xff]   ;;  %s1689_s10 = sshll.u32 %s2037_s3, 4  ;;  %s1690_s10 = int_to_ptr.vmem [resolvable:$true] %s1689_s10 }
  0x4c   :  { %v132_v4 = vunpack.c.0.s8 %v131_v2  ;;  %v2170_v32 = vunpack.c.h.bf16 %v1749_v14  ;;  %v2172_v33 = vunpack.c.l.bf16 %v1751_v25  ;;  %v2177_v40 = vunpack.c.h.bf16 %v1751_v25  ;;  %v1754_v59 = vld [vmem:[#allocation3 + $0x38] sm:$0xff]   ;;  %s1998_s1 = scalar_lea.vmem %s1690_s10, 128  ;;  %p2003_p5 = scmp.lt.s32.totalorder %s1690_s10, %s1690_s10 }
  0x4d   :  { %v2145_v9 = vsub.s32 0, %v2135_v3  ;;  %v2181_v43 = vunpack.c.l.bf16 %v1750_v38  ;;  %v2185_v47 = vunpack.c.h.bf16 %v1750_v38  ;;  %v2189_v50 = vunpack.c.l.bf16 %v1752_v45  ;;  %p1999_p4 = scmp.ne.s32.totalorder %s1690_s10, %s1998_s1  ;;  %p2004_p6 = scmp.lt.s32.totalorder %s1998_s1, %s1998_s1 }
  0x4e   :  { %v2138_v5 = vsub.s32 %v132_v4, %v2135_v3  ;;  %v2192_v54 = vunpack.c.h.bf16 %v1752_v45  ;;  %v2196_v57 = vunpack.c.l.bf16 %v1753_v52  ;;  %v2199_v61 = vunpack.c.h.bf16 %v1753_v52 }
  0x4f   :  { %v2203_v1 = vunpack.c.l.bf16 %v1754_v59  ;;  %v2206_v4 = vunpack.c.h.bf16 %v1754_v59  ;;  %vm291_vm0 = vcmask 130112   ;;  %vm356_vm1 = vcmask 1041409   ;;  %p2005_p7 = por %p2004_p6, %p2003_p5 }
  0x50   :  { %v136_v8 = vrot.slane %v2140_v7, %v2138_v5  ;;  %v143_v21 = vrot.slane %v129_v15, %v2138_v5  ;;  %vm358_vm2 = vcmask 1042434   ;;  %vm360_vm3 = vcmask 1043459  }
  0x51   :  { %vm362_vm4 = vcmask 1044484   ;;  %vm364_vm5 = vcmask 1045509   ;;  %vm366_vm6 = vcmask 1046534   ;;  %vm368_vm7 = vcmask 1047559   ;;  %p2006_p8 = pnand %p2005_p7, %p1999_p4 }
  0x52   :  { %v152_v12 = vrot.slane %v136_v8, %v2138_v5  ;;  %v144_v13 = vcombine.high %v136_v8, %v136_v8  ;;  %v159_v30 = vrot.slane %v143_v21, %v2138_v5  ;;  %v145_v37 = vcombine.high %v143_v21, %v143_v21 }
  0x53   :  { %vm372_vm9 = vcmask 130048   ;;  %vm2036_vm10 = vmmov 0  }
  0x54   :  { %v181_v18 = vrot.slane %v152_v12, %v2145_v9  ;;  %v166_v19 = vrot.slane %v144_v13, %v2138_v5  ;;  %v174_v20 = vcombine.high %v152_v12, %v152_v12  ;;  %v197_v35 = vrot.slane %v159_v30, %v2145_v9 }
  0x55   :  { %v173_v44 = vrot.slane %v145_v37, %v2138_v5  ;;  %v175_v51 = vcombine.high %v159_v30, %v159_v30 }
  0x56   :  { %v218_v22 = vmul.f32 %v2147_v11, %v181_v18  ;;  %v185_v23 = vrot.slane %v166_v19, %v2145_v9  ;;  %v219_v28 = vmul.f32 %v2154_v17, %v181_v18  ;;  %v189_v29 = vrot.slane %v174_v20, %v2145_v9 }
  0x57   :  { %v176_v36 = vcombine.high %v166_v19, %v166_v19  ;;  %v226_v41 = vmul.f32 %v2172_v33, %v197_v35  ;;  %v227_v46 = vmul.f32 %v2177_v40, %v197_v35  ;;  %v201_v49 = vrot.slane %v173_v44, %v2145_v9 }
  0x58   :  { %234 = vadd.xlane.f32.xlu0 %v218_v22  ;;  %v220_v27 = vmul.f32 %v2152_v16, %v185_v23  ;;  %v221_v31 = vmul.f32 %v2161_v24, %v185_v23  ;;  %v222_v34 = vmul.f32 %v2163_v26, %v189_v29  ;;  %v223_v39 = vmul.f32 %v2170_v32, %v189_v29 }
  0x59   :  { %v193_v42 = vrot.slane %v176_v36, %v2145_v9  ;;  %v228_v55 = vmul.f32 %v2189_v50, %v201_v49  ;;  %v205_v56 = vrot.slane %v175_v51, %v2145_v9  ;;  %v177_v58 = vcombine.high %v173_v44, %v173_v44 }
  0x5a   :  { %238 = vadd.xlane.f32.xlu1 %v220_v27  ;;  %v229_v60 = vmul.f32 %v2192_v54, %v201_v49  ;;  %v2211_v18 = vand.u32 127, %v125_v0 }
  0x5b   :  { %v224_v48 = vmul.f32 %v2181_v43, %v193_v42  ;;  %v225_v53 = vmul.f32 %v2185_v47, %v193_v42  ;;  %v230_v62 = vmul.f32 %v2196_v57, %v205_v56  ;;  %v209_v63 = vrot.slane %v177_v58, %v2145_v9 }
  0x5c   :  { %236 = vadd.xlane.f32.xlu0 %v219_v28  ;;  %v231_v2 = vmul.f32 %v2199_v61, %v205_v56  ;;  %v286_v21 = vadd.s32 4294967288, %v2211_v18  ;;  %v2216_v25 = vsub.s32 %v2211_v18, %v2135_v3  ;;  %vm127_vm8 = vcmp.lt.s32.totalorder %v2211_v18, 8 }
  0x5d   :  { %v232_v6 = vmul.f32 %v2203_v1, %v209_v63  ;;  %v233_v8 = vmul.f32 %v2206_v4, %v209_v63 }
  0x5e   :  { %240 = vadd.xlane.f32.xlu1 %v221_v31  ;;  %v2219_v27 = vsub.s32 %v286_v21, %v2135_v3 }
  0x60   :  { %242 = vadd.xlane.f32.xlu0 %v222_v34 }
  0x62   :  { %244 = vadd.xlane.f32.xlu1 %v223_v39 }
  0x64   :  { %250 = vadd.xlane.f32.xlu0 %v226_v41 }
  0x66   :  { %252 = vadd.xlane.f32.xlu1 %v227_v46 }
  0x68   :  { %246 = vadd.xlane.f32.xlu0 %v224_v48 }
  0x6a   :  { %248 = vadd.xlane.f32.xlu1 %v225_v53 }
  0x6c   :  { %254 = vadd.xlane.f32.xlu0 %v228_v55 }
  0x6e   :  { %256 = vadd.xlane.f32.xlu1 %v229_v60 }
  0x70   :  { %258 = vadd.xlane.f32.xlu0 %v230_v62 }
  0x72   :  { %260 = vadd.xlane.f32.xlu1 %v231_v2 }
  0x74   :  { %262 = vadd.xlane.f32.xlu0 %v232_v6 }
  0x76   :  { %264 = vadd.xlane.f32.xlu1 %v233_v8 }
  0xe5   :  { %v235_v10 = vpop.xlane.xlu0 %234 }
  0xe6   :  { %v285_v39 = vrot.slane %v235_v10, %v2216_v25 }
  0xe7   :  { %v239_v12 = vpop.xlane.xlu1 %238 }
  0xe8   :  { %v296_v34 = vrot.slane %v239_v12, %v2216_v25 }
  0xe9   :  { %v237_v13 = vpop.xlane.xlu0 %236 }
  0xea   :  { %v290_v35 = vrot.slane %v237_v13, %v2219_v27 }
  0xeb   :  { %v241_v14 = vpop.xlane.xlu1 %240 }
  0xec   :  { %v300_v29 = vrot.slane %v241_v14, %v2219_v27  ;;  %v292_v45 = vsel %vm291_vm0, %v290_v35, %v285_v39  ;;  %v1888_v35 = vld [vmem:[#allocation8 + $0x30] sm:$0xff]  }
  0xed   :  { %v243_v15 = vpop.xlane.xlu0 %242 }
  0xee   :  { %v305_v0 = vrot.slane %v243_v15, %v2216_v25  ;;  %v301_v41 = vsel %vm291_vm0, %v300_v29, %v296_v34  ;;  %v1883_v29 = vld [vmem:[#allocation8 + $0x8] sm:$0xff]  }
  0xef   :  { %v245_v19 = vpop.xlane.xlu1 %244  ;;  %v357_v51 = vsel %vm356_vm1, %v301_v41, %v292_v45  ;;  %v1887_v34 = vld [vmem:[#allocation8 + $0x28] sm:$0xff]  }
  0xf0   :  { %v309_v30 = vrot.slane %v245_v19, %v2219_v27 }
  0xf1   :  { %v251_v20 = vpop.xlane.xlu0 %250 }
  0xf2   :  { %v310_v42 = vsel %vm291_vm0, %v309_v30, %v305_v0  ;;  %v323_v53 = vrot.slane %v251_v20, %v2216_v25  ;;  %v1884_v30 = vld [vmem:[#allocation8 + $0x10] sm:$0xff]   ;;  %v1885_v0 = vld [vmem:[#allocation8 + $0x18] sm:$0xff]  }
  0xf3   :  { %v253_v22 = vpop.xlane.xlu1 %252  ;;  %v359_v58 = vsel %vm358_vm2, %v310_v42, %v357_v51  ;;  %v2299_v51 = vsub.s32 2, %v2135_v3 }
  0xf4   :  { %v327_v52 = vrot.slane %v253_v22, %v2219_v27 }
  0xf5   :  { %v247_v23 = vpop.xlane.xlu0 %246 }
  0xf6   :  { %v314_v37 = vrot.slane %v247_v23, %v2216_v25  ;;  %v328_v6 = vsel %vm291_vm0, %v327_v52, %v323_v53  ;;  %v1882_v23 = vld [vmem:[#allocation8] sm:$0xff]  }
  0xf7   :  { %v249_v28 = vpop.xlane.xlu1 %248 }
  0xf8   :  { %v318_v36 = vrot.slane %v249_v28, %v2219_v27  ;;  %v2035_v28 = vmov 0.0  }
  0xf9   :  { %v255_v31 = vpop.xlane.xlu0 %254  ;;  %1791 = vmatprep.subr.bf16.mxu0 %v2035_v28  ;;  %1807 = vmatprep.mubr.msk.bf16.mxu0 %vm2036_vm10, %v2035_v28 }
  0xfa   :  { %v319_v46 = vsel %vm291_vm0, %v318_v36, %v314_v37  ;;  %v332_v49 = vrot.slane %v255_v31, %v2216_v25  ;;  %1792 = vmatpush3.bf16.msra.mxu0 %v1882_v23  ;;  %1811 = vmatprep.subr.bf16.mxu1 %v2035_v28  ;;  %v1886_v31 = vld [vmem:[#allocation8 + $0x20] sm:$0xff]   ;;  %v1889_v36 = vld [vmem:[#allocation8 + $0x38] sm:$0xff]   ;;  %v544_v37 = vpack.c.bf16 %v2140_v7, %v2140_v7 }
  0xfb   :  { %v257_v38 = vpop.xlane.xlu1 %256  ;;  %v361_v60 = vsel %vm360_vm3, %v319_v46, %v359_v58  ;;  %1793 = vmatprep.subr.bf16.mxu0 %v2035_v28  ;;  %1812 = vmatpush3.bf16.msra.mxu1 %v1882_v23  ;;  %v2308_v58 = vsub.s32 4, %v2135_v3 }
  0xfc   :  { %v336_v48 = vrot.slane %v257_v38, %v2219_v27  ;;  %v363_v13 = vsel %vm362_vm4, %v328_v6, %v361_v60  ;;  %1813 = vmatprep.subr.bf16.mxu1 %v2035_v28  ;;  %1827 = vmatprep.mubr.msk.bf16.mxu1 %vm2036_vm10, %v2035_v28  ;;  %v2312_v60 = vsub.s32 5, %v2135_v3  ;;  %v2320_v6 = vsub.s32 7, %v2135_v3 }
  0xfd   :  { %v259_v44 = vpop.xlane.xlu0 %258 }
  0xfe   :  { %v341_v56 = vrot.slane %v259_v44, %v2216_v25  ;;  %v337_v63 = vsel %vm291_vm0, %v336_v48, %v332_v49  ;;  %1794 = vmatpush3.bf16.msra.mxu0 %v1883_v29  ;;  %v2296_v49 = vsub.s32 1, %v2135_v3 }
  0xff   :  { %v261_v55 = vpop.xlane.xlu1 %260  ;;  %v365_v14 = vsel %vm364_vm5, %v337_v63, %v363_v13  ;;  %1795 = vmatprep.subr.bf16.mxu0 %v2035_v28  ;;  %1814 = vmatpush3.bf16.msra.mxu1 %v1883_v29  ;;  %v2316_v63 = vsub.s32 6, %v2135_v3 }
 0x100   :  { %v345_v59 = vrot.slane %v261_v55, %v2219_v27  ;;  %1815 = vmatprep.subr.bf16.mxu1 %v2035_v28  ;;  %v2304_v55 = vsub.s32 3, %v2135_v3 }
 0x101   :  { %v263_v62 = vpop.xlane.xlu0 %262 }
 0x102   :  { %v350_v2 = vrot.slane %v263_v62, %v2216_v25  ;;  %v346_v8 = vsel %vm291_vm0, %v345_v59, %v341_v56  ;;  %1796 = vmatpush3.bf16.msra.mxu0 %v1884_v30 }
 0x103   :  { %v265_v10 = vpop.xlane.xlu1 %264  ;;  %v367_v19 = vsel %vm366_vm6, %v346_v8, %v365_v14  ;;  %1797 = vmatprep.subr.bf16.mxu0 %v2035_v28  ;;  %1816 = vmatpush3.bf16.msra.mxu1 %v1884_v30 }
 0x104   :  { %v354_v12 = vrot.slane %v265_v10, %v2219_v27  ;;  %1817 = vmatprep.subr.bf16.mxu1 %v2035_v28 }
 0x106   :  { %v355_v15 = vsel %vm291_vm0, %v354_v12, %v350_v2  ;;  %1798 = vmatpush3.bf16.msra.mxu0 %v1885_v0 }
 0x107   :  { %v369_v20 = vsel %vm368_vm7, %v355_v15, %v367_v19  ;;  %1799 = vmatprep.subr.bf16.mxu0 %v2035_v28  ;;  %1818 = vmatpush3.bf16.msra.mxu1 %v1885_v0 }
 0x108   :  { %v2255_v21 = vsel %vm127_vm8, %v369_v20, -1e+30  ;;  %1819 = vmatprep.subr.bf16.mxu1 %v2035_v28 }
 0x109   :  { %v373_v22 = vsel %vm372_vm9, %v2255_v21, -inf }
 0x10a   :  { %374 = vmax.xlane.f32.xlu0 %v373_v22  ;;  %1800 = vmatpush3.bf16.msra.mxu0 %v1886_v31 }
 0x10b   :  { %1801 = vmatprep.subr.bf16.mxu0 %v2035_v28  ;;  %1820 = vmatpush3.bf16.msra.mxu1 %v1886_v31 }
 0x10c   :  { %1821 = vmatprep.subr.bf16.mxu1 %v2035_v28 }
 0x10e   :  { %1802 = vmatpush3.bf16.msra.mxu0 %v1887_v34 }
 0x10f   :  { %1803 = vmatprep.subr.bf16.mxu0 %v2035_v28  ;;  %1822 = vmatpush3.bf16.msra.mxu1 %v1887_v34 }
 0x110   :  { %1823 = vmatprep.subr.bf16.mxu1 %v2035_v28 }
 0x112   :  { %1804 = vmatpush3.bf16.msra.mxu0 %v1888_v35 }
 0x113   :  { %1805 = vmatprep.subr.bf16.mxu0 %v2035_v28  ;;  %1824 = vmatpush3.bf16.msra.mxu1 %v1888_v35 }
 0x114   :  { %1825 = vmatprep.subr.bf16.mxu1 %v2035_v28 }
 0x116   :  { %1806 = vmatpush3.bf16.msra.mxu0 %v1889_v36 }
 0x117   :  { %1826 = vmatpush3.bf16.msra.mxu1 %v1889_v36  ;;  %1831 = vmatprep.subr.bf16.mxu0 %v2035_v28 }
 0x118   :  { %1851 = vmatprep.subr.bf16.mxu1 %v2035_v28 }
 0x119   :  { %1808 = vmatmul.mubr.bf16.vlgmr.msra.gmra.mrb[0].mxu0 %v544_v37 }
 0x11a   :  { %1832 = vmatpush3.bf16.msra.mxu0 %v1882_v23  ;;  %1847 = vmatprep.mubr.msk.bf16.mxu0 %vm2036_vm10, %v2035_v28 }
 0x11b   :  { %1833 = vmatprep.subr.bf16.mxu0 %v2035_v28 }
 0x11e   :  { %1834 = vmatpush3.bf16.msra.mxu0 %v1883_v29 }
 0x11f   :  { %1835 = vmatprep.subr.bf16.mxu0 %v2035_v28 }
 0x122   :  { %1836 = vmatpush3.bf16.msra.mxu0 %v1884_v30 }
 0x123   :  { %1837 = vmatprep.subr.bf16.mxu0 %v2035_v28 }
 0x126   :  { %1838 = vmatpush3.bf16.msra.mxu0 %v1885_v0 }
 0x127   :  { %1839 = vmatprep.subr.bf16.mxu0 %v2035_v28 }
 0x12a   :  { %1840 = vmatpush3.bf16.msra.mxu0 %v1886_v31 }
 0x12b   :  { %1841 = vmatprep.subr.bf16.mxu0 %v2035_v28 }
 0x12e   :  { %1842 = vmatpush3.bf16.msra.mxu0 %v1887_v34 }
 0x12f   :  { %1843 = vmatprep.subr.bf16.mxu0 %v2035_v28 }
 0x132   :  { %1844 = vmatpush3.bf16.msra.mxu0 %v1888_v35 }
 0x133   :  { %1845 = vmatprep.subr.bf16.mxu0 %v2035_v28 }
 0x136   :  { %1846 = vmatpush3.bf16.msra.mxu0 %v1889_v36 }
 0x197   :  { %v375_v7 = vpop.xlane.xlu0 %374 }
 0x198   :  { %v376_v38 = vsub.f32 %v2255_v21, %v375_v7 }
 0x19a   :  { %v377_v39 = vmul.f32 1.442695, %v376_v38 }
 0x19c   :  { %1898 = vpow2.f32 %v377_v39 }
 0x1a6   :  { %v1899_v41 = vpop.eup %1898 }
 0x1a7   :  { %v379_v42 = vsel %vm372_vm9, %v1899_v41, 0.0 }
 0x1a8   :  { %380 = vadd.xlane.f32.xlu1 %v379_v42 }
 0x1ec   :  { %v2323_v10 = vpop.f32.mrb[0].mxu0 }
 0x1ed   :  { %v1809_v12 = vpop.f32.mrb[1].mxu0 }
 0x1ee   :  { %v646_v13 = vpop.f32.mrb[2].mxu0 }
 0x1ef   :  { %v1810_v14 = vpop.f32.mrb[3].mxu0 }
 0x235   :  { %v381_v44 = vpop.xlane.xlu1 %380 }
 0x236   :  { %1900 = vrcp.f32 %v381_v44 }
 0x240   :  { %v1901_v45 = vpop.eup %1900 }
 0x241   :  { %v383_v46 = vmul.f32 %v1901_v45, %v1899_v41 }
 0x243   :  { %v387_v48 = vrot.slane %v383_v46, %v2145_v9  ;;  %v398_v52 = vrot.slane %v383_v46, %v2296_v49  ;;  %v409_v53 = vrot.slane %v383_v46, %v2299_v51  ;;  %v420_v56 = vrot.slane %v383_v46, %v2304_v55 }
 0x244   :  { %v431_v59 = vrot.slane %v383_v46, %v2308_v58  ;;  %v442_v62 = vrot.slane %v383_v46, %v2312_v60  ;;  %v453_v2 = vrot.slane %v383_v46, %v2316_v63  ;;  %v464_v8 = vrot.slane %v383_v46, %v2320_v6 }
 0x245   :  { %393 = vbcast.lane.b32.xlu1 %v387_v48, 264  ;;  %389 = vbcast.lane.b32.xlu0 %v387_v48, 256 }
 0x249   :  { %400 = vbcast.lane.b32.xlu1 %v398_v52, 256  ;;  %411 = vbcast.lane.b32.xlu0 %v409_v53, 256 }
 0x24d   :  { %404 = vbcast.lane.b32.xlu1 %v398_v52, 264  ;;  %422 = vbcast.lane.b32.xlu0 %v420_v56, 256 }
 0x251   :  { %415 = vbcast.lane.b32.xlu1 %v409_v53, 264  ;;  %433 = vbcast.lane.b32.xlu0 %v431_v59, 256 }
 0x255   :  { %426 = vbcast.lane.b32.xlu1 %v420_v56, 264  ;;  %444 = vbcast.lane.b32.xlu0 %v442_v62, 256 }
 0x259   :  { %437 = vbcast.lane.b32.xlu1 %v431_v59, 264  ;;  %455 = vbcast.lane.b32.xlu0 %v453_v2, 256 }
 0x25d   :  { %448 = vbcast.lane.b32.xlu1 %v442_v62, 264  ;;  %466 = vbcast.lane.b32.xlu0 %v464_v8, 256 }
 0x261   :  { %459 = vbcast.lane.b32.xlu1 %v453_v2, 264 }
 0x265   :  { %470 = vbcast.lane.b32.xlu1 %v464_v8, 264 }
 0x2b7   :  { %v394_v15 = vpop.permute.xlu1 %393  ;;  %v390_v19 = vpop.permute.xlu0 %389 }
 0x2b8   :  { %v473_v29 = vmul.f32 %v2154_v17, %v394_v15  ;;  %v472_v30 = vmul.f32 %v2147_v11, %v390_v19 }
 0x2ba   :  { %v488_v7 = vadd.f32 %v473_v29, %v472_v30 }
 0x2bb   :  { %v401_v20 = vpop.permute.xlu1 %400  ;;  %v412_v21 = vpop.permute.xlu0 %411 }
 0x2bc   :  { %v474_v34 = vmul.f32 %v2152_v16, %v401_v20  ;;  %v476_v36 = vmul.f32 %v2163_v26, %v412_v21  ;;  %v489_v48 = vrot.slane %v488_v7, 4 }
 0x2be   :  { %v490_v12 = vadd.f32 %v489_v48, %v488_v7 }
 0x2bf   :  { %v405_v22 = vpop.permute.xlu1 %404  ;;  %v423_v3 = vpop.permute.xlu0 %422 }
 0x2c0   :  { %v475_v23 = vmul.f32 %v2161_v24, %v405_v22  ;;  %v478_v41 = vmul.f32 %v2181_v43, %v423_v3  ;;  %v491_v29 = vrot.slane %v490_v12, 2 }
 0x2c2   :  { %v495_v37 = vadd.f32 %v475_v23, %v474_v34 }
 0x2c3   :  { %v416_v0 = vpop.permute.xlu1 %415  ;;  %v434_v31 = vpop.permute.xlu0 %433 }
 0x2c4   :  { %v477_v35 = vmul.f32 %v2170_v32, %v416_v0  ;;  %v496_v45 = vrot.slane %v495_v37, 4  ;;  %v480_v56 = vmul.f32 %v2172_v33, %v434_v31 }
 0x2c6   :  { %v502_v38 = vadd.f32 %v477_v35, %v476_v36  ;;  %v497_v2 = vadd.f32 %v496_v45, %v495_v37 }
 0x2c7   :  { %v427_v39 = vpop.permute.xlu1 %426  ;;  %v445_v44 = vpop.permute.xlu0 %444 }
 0x2c8   :  { %v479_v42 = vmul.f32 %v2185_v47, %v427_v39  ;;  %v503_v52 = vrot.slane %v502_v38, 4  ;;  %v482_v21 = vmul.f32 %v2189_v50, %v445_v44  ;;  %v498_v3 = vrot.slane %v497_v2, 2 }
 0x2ca   :  { %v509_v46 = vadd.f32 %v479_v42, %v478_v41  ;;  %v504_v13 = vadd.f32 %v503_v52, %v502_v38  ;;  %v499_v39 = vadd.f32 %v498_v3, %v497_v2  ;;  %v492_v42 = vadd.f32 %v491_v29, %v490_v12 }
 0x2cb   :  { %v438_v53 = vpop.permute.xlu1 %437  ;;  %v456_v14 = vpop.permute.xlu0 %455 }
 0x2cc   :  { %v510_v59 = vrot.slane %v509_v46, 4  ;;  %v481_v62 = vmul.f32 %v2177_v40, %v438_v53  ;;  %v505_v30 = vrot.slane %v504_v13, 2  ;;  %v484_v35 = vmul.f32 %v2196_v57, %v456_v14 }
 0x2ce   :  { %v516_v8 = vadd.f32 %v481_v62, %v480_v56  ;;  %v511_v19 = vadd.f32 %v510_v59, %v509_v46  ;;  %v506_v44 = vadd.f32 %v505_v30, %v504_v13 }
 0x2cf   :  { %v449_v15 = vpop.permute.xlu1 %448  ;;  %v467_v38 = vpop.permute.xlu0 %466 }
 0x2d0   :  { %v517_v20 = vrot.slane %v516_v8, 4  ;;  %v483_v22 = vmul.f32 %v2192_v54, %v449_v15  ;;  %v512_v34 = vrot.slane %v511_v19, 2  ;;  %v486_v52 = vmul.f32 %v2203_v1, %v467_v38 }
 0x2d2   :  { %v518_v23 = vadd.f32 %v517_v20, %v516_v8  ;;  %v523_v0 = vadd.f32 %v483_v22, %v482_v21  ;;  %v513_v48 = vadd.f32 %v512_v34, %v511_v19  ;;  %v500_v8 = vrot.slane %v499_v39, 1 }
 0x2d3   :  { %v460_v31 = vpop.permute.xlu1 %459  ;;  %v507_v20 = vrot.slane %v506_v44, 1  ;;  %v493_v22 = vrot.slane %v492_v42, 1 }
 0x2d4   :  { %v485_v36 = vmul.f32 %v2199_v61, %v460_v31  ;;  %v519_v37 = vrot.slane %v518_v23, 2  ;;  %v524_v7 = vrot.slane %v523_v0, 4  ;;  %v514_v2 = vrot.slane %v513_v48, 1 }
 0x2d5   :  { %v501_v29 = vadd.f32 %v500_v8, %v499_v39  ;;  %v508_v31 = vadd.f32 %v507_v20, %v506_v44  ;;  %v494_v34 = vadd.f32 %v493_v22, %v492_v42 }
 0x2d6   :  { %v530_v41 = vadd.f32 %v485_v36, %v484_v35  ;;  %v525_v45 = vadd.f32 %v524_v7, %v523_v0  ;;  %v520_v59 = vadd.f32 %v519_v37, %v518_v23  ;;  %v515_v35 = vadd.f32 %v514_v2, %v513_v48 }
 0x2d7   :  { %v471_v46 = vpop.permute.xlu1 %470  ;;  %v601_v7 = vsel %vm356_vm1, %v501_v29, %v494_v34 }
 0x2d8   :  { %v531_v53 = vrot.slane %v530_v41, 4  ;;  %v487_v56 = vmul.f32 %v2206_v4, %v471_v46  ;;  %v526_v62 = vrot.slane %v525_v45, 2  ;;  %v521_v13 = vrot.slane %v520_v59, 1 }
 0x2d9   :  { %v602_v46 = vsel %vm358_vm2, %v508_v31, %v601_v7 }
 0x2da   :  { %v532_v14 = vadd.f32 %v531_v53, %v530_v41  ;;  %v537_v15 = vadd.f32 %v487_v56, %v486_v52  ;;  %v527_v21 = vadd.f32 %v526_v62, %v525_v45  ;;  %v522_v37 = vadd.f32 %v521_v13, %v520_v59 }
 0x2db   :  { %v603_v53 = vsel %vm360_vm3, %v515_v35, %v602_v46 }
 0x2dc   :  { %v533_v3 = vrot.slane %v532_v14, 2  ;;  %v538_v12 = vrot.slane %v537_v15, 4  ;;  %v528_v30 = vrot.slane %v527_v21, 1  ;;  %v604_v39 = vsel %vm362_vm4, %v522_v37, %v603_v53 }
 0x2de   :  { %v534_v19 = vadd.f32 %v533_v3, %v532_v14  ;;  %v539_v0 = vadd.f32 %v538_v12, %v537_v15  ;;  %v529_v38 = vadd.f32 %v528_v30, %v527_v21 }
 0x2e0   :  { %v535_v36 = vrot.slane %v534_v19, 1  ;;  %v540_v23 = vrot.slane %v539_v0, 2  ;;  %v605_v44 = vsel %vm364_vm5, %v529_v38, %v604_v39 }
 0x2e2   :  { %v541_v41 = vadd.f32 %v540_v23, %v539_v0  ;;  %v536_v45 = vadd.f32 %v535_v36, %v534_v19 }
 0x2e4   :  { %v542_v52 = vrot.slane %v541_v41, 1  ;;  %v606_v42 = vsel %vm366_vm6, %v536_v45, %v605_v44 }
 0x2e6   :  { %v543_v56 = vadd.f32 %v542_v52, %v541_v41 }
 0x2e8   :  { %v607_v48 = vsel %vm368_vm7, %v543_v56, %v606_v42 }
 0x2e9   :  { %v644_v59 = vadd.f32 %v2323_v10, %v607_v48 }
 0x2eb   :  { %v650_v62 = vcombine.high %v644_v59, %v644_v59  ;;  %v657_v8 = vrot.slane %v644_v59, %v2138_v5  ;;  %v1055_v14 = vpack.c.bf16 %v644_v59, %v644_v59 }
 0x2ed   :  { %v664_v15 = vrot.slane %v650_v62, %v2138_v5  ;;  %v665_v20 = vcombine.high %v657_v8, %v657_v8  ;;  %1828 = vmatmul.mubr.bf16.vlgmr.msra.gmra.mrb[0].mxu1 %v1055_v14  ;;  %v673_v21 = vrot.slane %v657_v8, %v2138_v5 }
 0x2ee   :  { %1867 = vmatprep.mubr.msk.bf16.mxu1 %vm2036_vm10, %v2035_v28 }
 0x2ef   :  { %v702_v22 = vrot.slane %v673_v21, %v2145_v9  ;;  %v695_v2 = vcombine.high %v673_v21, %v673_v21  ;;  %v687_v3 = vrot.slane %v665_v20, %v2138_v5  ;;  %v680_v10 = vrot.slane %v664_v15, %v2138_v5 }
 0x2f0   :  { %v666_v19 = vcombine.high %v664_v15, %v664_v15 }
 0x2f1   :  { %v740_v12 = vmul.f32 %v2154_v17, %v702_v22  ;;  %v739_v13 = vmul.f32 %v2147_v11, %v702_v22  ;;  %v710_v29 = vrot.slane %v695_v2, %v2145_v9  ;;  %v706_v30 = vrot.slane %v687_v3, %v2145_v9 }
 0x2f2   :  { %v718_v34 = vrot.slane %v680_v10, %v2145_v9  ;;  %v697_v35 = vcombine.high %v687_v3, %v687_v3  ;;  %v694_v7 = vrot.slane %v666_v19, %v2138_v5  ;;  %v696_v46 = vcombine.high %v680_v10, %v680_v10 }
 0x2f3   :  { %757 = vadd.xlane.f32.xlu1 %v740_v12  ;;  %755 = vadd.xlane.f32.xlu0 %v739_v13  ;;  %v744_v0 = vmul.f32 %v2170_v32, %v710_v29  ;;  %v741_v31 = vmul.f32 %v2152_v16, %v706_v30  ;;  %v742_v36 = vmul.f32 %v2161_v24, %v706_v30 }
 0x2f4   :  { %v748_v23 = vmul.f32 %v2177_v40, %v718_v34  ;;  %v714_v37 = vrot.slane %v697_v35, %v2145_v9  ;;  %v743_v38 = vmul.f32 %v2163_v26, %v710_v29  ;;  %v722_v45 = vrot.slane %v694_v7, %v2145_v9 }
 0x2f5   :  { %v747_v52 = vmul.f32 %v2172_v33, %v718_v34  ;;  %v726_v39 = vrot.slane %v696_v46, %v2145_v9  ;;  %v698_v56 = vcombine.high %v694_v7, %v694_v7 }
 0x2f6   :  { %v746_v41 = vmul.f32 %v2185_v47, %v714_v37  ;;  %v750_v53 = vmul.f32 %v2192_v54, %v722_v45  ;;  %v745_v44 = vmul.f32 %v2181_v43, %v714_v37  ;;  %v749_v59 = vmul.f32 %v2189_v50, %v722_v45 }
 0x2f7   :  { %765 = vadd.xlane.f32.xlu1 %v744_v0  ;;  %759 = vadd.xlane.f32.xlu0 %v741_v31  ;;  %v752_v42 = vmul.f32 %v2199_v61, %v726_v39  ;;  %v730_v48 = vrot.slane %v698_v56, %v2145_v9  ;;  %v751_v8 = vmul.f32 %v2196_v57, %v726_v39 }
 0x2f9   :  { %v754_v62 = vmul.f32 %v2206_v4, %v730_v48  ;;  %v753_v14 = vmul.f32 %v2203_v1, %v730_v48 }
 0x2fb   :  { %761 = vadd.xlane.f32.xlu0 %v742_v36  ;;  %773 = vadd.xlane.f32.xlu1 %v748_v23 }
 0x2ff   :  { %763 = vadd.xlane.f32.xlu0 %v743_v38  ;;  %769 = vadd.xlane.f32.xlu1 %v746_v41 }
 0x303   :  { %771 = vadd.xlane.f32.xlu0 %v747_v52  ;;  %777 = vadd.xlane.f32.xlu1 %v750_v53 }
 0x307   :  { %767 = vadd.xlane.f32.xlu0 %v745_v44  ;;  %781 = vadd.xlane.f32.xlu1 %v752_v42 }
 0x30b   :  { %775 = vadd.xlane.f32.xlu0 %v749_v59  ;;  %785 = vadd.xlane.f32.xlu1 %v754_v62 }
 0x30f   :  { %779 = vadd.xlane.f32.xlu0 %v751_v8 }
 0x313   :  { %783 = vadd.xlane.f32.xlu0 %v753_v14 }
 0x380   :  { %v758_v15 = vpop.xlane.xlu1 %757  ;;  %v756_v20 = vpop.xlane.xlu0 %755 }
 0x381   :  { %v810_v31 = vrot.slane %v758_v15, %v2219_v27  ;;  %v806_v34 = vrot.slane %v756_v20, %v2216_v25 }
 0x383   :  { %v811_v46 = vsel %vm291_vm0, %v810_v31, %v806_v34 }
 0x384   :  { %v766_v21 = vpop.xlane.xlu1 %765  ;;  %v760_v22 = vpop.xlane.xlu0 %759 }
 0x385   :  { %v815_v35 = vrot.slane %v760_v22, %v2216_v25  ;;  %v828_v23 = vrot.slane %v766_v21, %v2219_v27 }
 0x388   :  { %v762_v2 = vpop.xlane.xlu0 %761  ;;  %v774_v3 = vpop.xlane.xlu1 %773 }
 0x389   :  { %v819_v19 = vrot.slane %v762_v2, %v2219_v27  ;;  %v846_v62 = vrot.slane %v774_v3, %v2219_v27 }
 0x38b   :  { %v820_v38 = vsel %vm291_vm0, %v819_v19, %v815_v35 }
 0x38c   :  { %v764_v10 = vpop.xlane.xlu0 %763  ;;  %v770_v12 = vpop.xlane.xlu1 %769  ;;  %v875_v39 = vsel %vm356_vm1, %v820_v38, %v811_v46 }
 0x38d   :  { %v824_v0 = vrot.slane %v764_v10, %v2216_v25  ;;  %v837_v41 = vrot.slane %v770_v12, %v2219_v27 }
 0x38f   :  { %v829_v45 = vsel %vm291_vm0, %v828_v23, %v824_v0 }
 0x390   :  { %v772_v13 = vpop.xlane.xlu0 %771  ;;  %v778_v29 = vpop.xlane.xlu1 %777  ;;  %v876_v42 = vsel %vm358_vm2, %v829_v45, %v875_v39 }
 0x391   :  { %v842_v56 = vrot.slane %v772_v13, %v2216_v25  ;;  %v855_v48 = vrot.slane %v778_v29, %v2219_v27 }
 0x393   :  { %v847_v21 = vsel %vm291_vm0, %v846_v62, %v842_v56 }
 0x394   :  { %v768_v30 = vpop.xlane.xlu0 %767  ;;  %v782_v37 = vpop.xlane.xlu1 %781 }
 0x395   :  { %v833_v36 = vrot.slane %v768_v30, %v2216_v25  ;;  %v864_v14 = vrot.slane %v782_v37, %v2219_v27 }
 0x397   :  { %v838_v52 = vsel %vm291_vm0, %v837_v41, %v833_v36 }
 0x398   :  { %v776_v7 = vpop.xlane.xlu0 %775  ;;  %v877_v8 = vsel %vm360_vm3, %v838_v52, %v876_v42  ;;  %v786_v15 = vpop.xlane.xlu1 %785 }
 0x399   :  { %v851_v53 = vrot.slane %v776_v7, %v2216_v25  ;;  %v873_v10 = vrot.slane %v786_v15, %v2219_v27  ;;  %v878_v13 = vsel %vm362_vm4, %v847_v21, %v877_v8 }
 0x39b   :  { %v856_v20 = vsel %vm291_vm0, %v855_v48, %v851_v53 }
 0x39c   :  { %v780_v44 = vpop.xlane.xlu0 %779  ;;  %v879_v3 = vsel %vm364_vm5, %v856_v20, %v878_v13 }
 0x39d   :  { %v860_v59 = vrot.slane %v780_v44, %v2216_v25 }
 0x39f   :  { %v865_v22 = vsel %vm291_vm0, %v864_v14, %v860_v59 }
 0x3a0   :  { %v784_v2 = vpop.xlane.xlu0 %783  ;;  %v880_v30 = vsel %vm366_vm6, %v865_v22, %v879_v3 }
 0x3a1   :  { %v869_v12 = vrot.slane %v784_v2, %v2216_v25 }
 0x3a3   :  { %v874_v29 = vsel %vm291_vm0, %v873_v10, %v869_v12 }
 0x3a4   :  { %v881_v19 = vsel %vm368_vm7, %v874_v29, %v880_v30 }
 0x3a5   :  { %v883_v0 = vsel %vm127_vm8, %v881_v19, -1e+30 }
 0x3a6   :  { %v884_v31 = vsel %vm372_vm9, %v883_v0, -inf }
 0x3a7   :  { %885 = vmax.xlane.f32.xlu0 %v884_v31 }
 0x3c0   :  { %v2415_v34 = vpop.f32.mrb[0].mxu1 }
 0x3c1   :  { %v1829_v35 = vpop.f32.mrb[1].mxu1 }
 0x3c2   :  { %v1109_v36 = vpop.f32.mrb[2].mxu1 }
 0x3c3   :  { %v1830_v23 = vpop.f32.mrb[3].mxu1 }
 0x434   :  { %v886_v37 = vpop.xlane.xlu0 %885 }
 0x435   :  { %v887_v7 = vsub.f32 %v883_v0, %v886_v37 }
 0x437   :  { %v888_v38 = vmul.f32 1.442695, %v887_v7 }
 0x439   :  { %1902 = vpow2.f32 %v888_v38 }
 0x443   :  { %v1903_v41 = vpop.eup %1902 }
 0x444   :  { %v890_v45 = vsel %vm372_vm9, %v1903_v41, 0.0 }
 0x445   :  { %891 = vadd.xlane.f32.xlu1 %v890_v45 }
 0x4d2   :  { %v892_v46 = vpop.xlane.xlu1 %891 }
 0x4d3   :  { %1904 = vrcp.f32 %v892_v46 }
 0x4dd   :  { %v1905_v52 = vpop.eup %1904 }
 0x4de   :  { %v894_v53 = vmul.f32 %v1905_v52, %v1903_v41 }
 0x4e0   :  { %v898_v39 = vrot.slane %v894_v53, %v2145_v9  ;;  %v909_v56 = vrot.slane %v894_v53, %v2296_v49  ;;  %v920_v44 = vrot.slane %v894_v53, %v2299_v51  ;;  %v931_v42 = vrot.slane %v894_v53, %v2304_v55 }
 0x4e1   :  { %v942_v48 = vrot.slane %v894_v53, %v2308_v58  ;;  %v953_v59 = vrot.slane %v894_v53, %v2312_v60  ;;  %v964_v62 = vrot.slane %v894_v53, %v2316_v63  ;;  %v975_v8 = vrot.slane %v894_v53, %v2320_v6 }
 0x4e2   :  { %904 = vbcast.lane.b32.xlu1 %v898_v39, 264  ;;  %900 = vbcast.lane.b32.xlu0 %v898_v39, 256 }
 0x4e6   :  { %911 = vbcast.lane.b32.xlu1 %v909_v56, 256  ;;  %922 = vbcast.lane.b32.xlu0 %v920_v44, 256 }
 0x4ea   :  { %915 = vbcast.lane.b32.xlu1 %v909_v56, 264  ;;  %933 = vbcast.lane.b32.xlu0 %v931_v42, 256 }
 0x4ee   :  { %926 = vbcast.lane.b32.xlu1 %v920_v44, 264  ;;  %944 = vbcast.lane.b32.xlu0 %v942_v48, 256 }
 0x4f2   :  { %937 = vbcast.lane.b32.xlu1 %v931_v42, 264  ;;  %955 = vbcast.lane.b32.xlu0 %v953_v59, 256 }
 0x4f6   :  { %948 = vbcast.lane.b32.xlu1 %v942_v48, 264  ;;  %966 = vbcast.lane.b32.xlu0 %v964_v62, 256 }
 0x4fa   :  { %959 = vbcast.lane.b32.xlu1 %v953_v59, 264  ;;  %977 = vbcast.lane.b32.xlu0 %v975_v8, 256 }
 0x4fe   :  { %970 = vbcast.lane.b32.xlu1 %v964_v62, 264 }
 0x502   :  { %981 = vbcast.lane.b32.xlu1 %v975_v8, 264 }
 0x554   :  { %v905_v14 = vpop.permute.xlu1 %904  ;;  %v901_v15 = vpop.permute.xlu0 %900 }
 0x555   :  { %v984_v12 = vmul.f32 %v2154_v17, %v905_v14  ;;  %v983_v13 = vmul.f32 %v2147_v11, %v901_v15 }
 0x557   :  { %v999_v35 = vadd.f32 %v984_v12, %v983_v13 }
 0x558   :  { %v912_v20 = vpop.permute.xlu1 %911  ;;  %v923_v21 = vpop.permute.xlu0 %922 }
 0x559   :  { %v985_v30 = vmul.f32 %v2152_v16, %v912_v20  ;;  %v987_v0 = vmul.f32 %v2163_v26, %v923_v21  ;;  %v1000_v46 = vrot.slane %v999_v35, 4 }
 0x55b   :  { %v1001_v59 = vadd.f32 %v1000_v46, %v999_v35 }
 0x55c   :  { %v916_v22 = vpop.permute.xlu1 %915  ;;  %v934_v2 = vpop.permute.xlu0 %933 }
 0x55d   :  { %v986_v10 = vmul.f32 %v2161_v24, %v916_v22  ;;  %v989_v37 = vmul.f32 %v2181_v43, %v934_v2  ;;  %v1002_v12 = vrot.slane %v1001_v59, 2 }
 0x55f   :  { %v1006_v31 = vadd.f32 %v986_v10, %v985_v30 }
 0x560   :  { %v927_v3 = vpop.permute.xlu1 %926  ;;  %v945_v29 = vpop.permute.xlu0 %944 }
 0x561   :  { %v988_v19 = vmul.f32 %v2170_v32, %v927_v3  ;;  %v1007_v41 = vrot.slane %v1006_v31, 4  ;;  %v991_v39 = vmul.f32 %v2172_v33, %v945_v29 }
 0x563   :  { %v1013_v36 = vadd.f32 %v988_v19, %v987_v0  ;;  %v1008_v42 = vadd.f32 %v1007_v41, %v1006_v31 }
 0x564   :  { %v938_v23 = vpop.permute.xlu1 %937  ;;  %v956_v38 = vpop.permute.xlu0 %955 }
 0x565   :  { %v990_v7 = vmul.f32 %v2185_v47, %v938_v23  ;;  %v1014_v52 = vrot.slane %v1013_v36, 4  ;;  %v993_v21 = vmul.f32 %v2189_v50, %v956_v38  ;;  %v1009_v2 = vrot.slane %v1008_v42, 2 }
 0x567   :  { %v1020_v45 = vadd.f32 %v990_v7, %v989_v37  ;;  %v1015_v62 = vadd.f32 %v1014_v52, %v1013_v36  ;;  %v1010_v23 = vadd.f32 %v1009_v2, %v1008_v42  ;;  %v1003_v7 = vadd.f32 %v1002_v12, %v1001_v59 }
 0x568   :  { %v949_v53 = vpop.permute.xlu1 %948  ;;  %v967_v8 = vpop.permute.xlu0 %966 }
 0x569   :  { %v1021_v56 = vrot.slane %v1020_v45, 4  ;;  %v992_v44 = vmul.f32 %v2177_v40, %v949_v53  ;;  %v1016_v13 = vrot.slane %v1015_v62, 2  ;;  %v995_v19 = vmul.f32 %v2196_v57, %v967_v8 }
 0x56b   :  { %v1027_v48 = vadd.f32 %v992_v44, %v991_v39  ;;  %v1022_v15 = vadd.f32 %v1021_v56, %v1020_v45  ;;  %v1017_v38 = vadd.f32 %v1016_v13, %v1015_v62 }
 0x56c   :  { %v960_v14 = vpop.permute.xlu1 %959  ;;  %v978_v36 = vpop.permute.xlu0 %977 }
 0x56d   :  { %v1028_v20 = vrot.slane %v1027_v48, 4  ;;  %v994_v22 = vmul.f32 %v2192_v54, %v960_v14  ;;  %v1023_v30 = vrot.slane %v1022_v15, 2  ;;  %v997_v52 = vmul.f32 %v2203_v1, %v978_v36 }
 0x56f   :  { %v1029_v10 = vadd.f32 %v1028_v20, %v1027_v48  ;;  %v1034_v3 = vadd.f32 %v994_v22, %v993_v21  ;;  %v1024_v46 = vadd.f32 %v1023_v30, %v1022_v15  ;;  %v1011_v48 = vrot.slane %v1010_v23, 1 }
 0x570   :  { %v971_v29 = vpop.permute.xlu1 %970  ;;  %v1018_v20 = vrot.slane %v1017_v38, 1  ;;  %v1004_v22 = vrot.slane %v1003_v7, 1 }
 0x571   :  { %v996_v0 = vmul.f32 %v2199_v61, %v971_v29  ;;  %v1030_v31 = vrot.slane %v1029_v10, 2  ;;  %v1035_v35 = vrot.slane %v1034_v3, 4  ;;  %v1025_v42 = vrot.slane %v1024_v46, 1 }
 0x572   :  { %v1012_v12 = vadd.f32 %v1011_v48, %v1010_v23  ;;  %v1019_v29 = vadd.f32 %v1018_v20, %v1017_v38  ;;  %v1005_v30 = vadd.f32 %v1004_v22, %v1003_v7 }
 0x573   :  { %v1041_v37 = vadd.f32 %v996_v0, %v995_v19  ;;  %v1036_v41 = vadd.f32 %v1035_v35, %v1034_v3  ;;  %v1031_v56 = vadd.f32 %v1030_v31, %v1029_v10  ;;  %v1026_v19 = vadd.f32 %v1025_v42, %v1024_v46 }
 0x574   :  { %v982_v45 = vpop.permute.xlu1 %981  ;;  %v1064_v35 = vsel %vm356_vm1, %v1012_v12, %v1005_v30 }
 0x575   :  { %v1042_v53 = vrot.slane %v1041_v37, 4  ;;  %v998_v39 = vmul.f32 %v2206_v4, %v982_v45  ;;  %v1037_v44 = vrot.slane %v1036_v41, 2  ;;  %v1032_v62 = vrot.slane %v1031_v56, 1 }
 0x577   :  { %v1043_v8 = vadd.f32 %v1042_v53, %v1041_v37  ;;  %v1048_v14 = vadd.f32 %v998_v39, %v997_v52  ;;  %v1038_v21 = vadd.f32 %v1037_v44, %v1036_v41  ;;  %v1033_v31 = vadd.f32 %v1032_v62, %v1031_v56 }
 0x578   :  { %v1065_v41 = vsel %vm358_vm2, %v1019_v29, %v1064_v35 }
 0x579   :  { %v1044_v2 = vrot.slane %v1043_v8, 2  ;;  %v1049_v59 = vrot.slane %v1048_v14, 4  ;;  %v1039_v13 = vrot.slane %v1038_v21, 1  ;;  %v1066_v52 = vsel %vm360_vm3, %v1026_v19, %v1065_v41 }
 0x57a   :  { %v1067_v23 = vsel %vm362_vm4, %v1033_v31, %v1066_v52 }
 0x57b   :  { %v1045_v15 = vadd.f32 %v1044_v2, %v1043_v8  ;;  %v1050_v3 = vadd.f32 %v1049_v59, %v1048_v14  ;;  %v1040_v36 = vadd.f32 %v1039_v13, %v1038_v21 }
 0x57d   :  { %v1046_v0 = vrot.slane %v1045_v15, 1  ;;  %v1051_v10 = vrot.slane %v1050_v3, 2  ;;  %v1068_v39 = vsel %vm364_vm5, %v1040_v36, %v1067_v23 }
 0x57f   :  { %v1052_v37 = vadd.f32 %v1051_v10, %v1050_v3  ;;  %v1047_v45 = vadd.f32 %v1046_v0, %v1045_v15 }
 0x581   :  { %v1053_v53 = vrot.slane %v1052_v37, 1  ;;  %v1069_v7 = vsel %vm366_vm6, %v1047_v45, %v1068_v39 }
 0x583   :  { %v1054_v38 = vadd.f32 %v1053_v53, %v1052_v37 }
 0x585   :  { %v1070_v46 = vsel %vm368_vm7, %v1054_v38, %v1069_v7 }
 0x586   :  { %v1107_v56 = vadd.f32 %v2415_v34, %v1070_v46 }
 0x588   :  { %v1518_v44 = vpack.c.bf16 %v1107_v56, %v1107_v56  ;;  %v1120_v48 = vrot.slane %v1107_v56, %v2138_v5  ;;  %v1113_v8 = vcombine.high %v1107_v56, %v1107_v56 }
 0x58a   :  { %1848 = vmatmul.mubr.bf16.vlgmr.msra.gmra.mrb[4].mxu0 %v1518_v44  ;;  %v1136_v14 = vrot.slane %v1120_v48, %v2138_v5  ;;  %v1128_v20 = vcombine.high %v1120_v48, %v1120_v48  ;;  %v1127_v21 = vrot.slane %v1113_v8, %v2138_v5 }
 0x58c   :  { %v1165_v22 = vrot.slane %v1136_v14, %v2145_v9  ;;  %v1158_v42 = vcombine.high %v1136_v14, %v1136_v14  ;;  %v1150_v2 = vrot.slane %v1128_v20, %v2138_v5  ;;  %v1143_v59 = vrot.slane %v1127_v21, %v2138_v5 }
 0x58d   :  { %v1129_v15 = vcombine.high %v1127_v21, %v1127_v21 }
 0x58e   :  { %v1203_v62 = vmul.f32 %v2154_v17, %v1165_v22  ;;  %v1202_v34 = vmul.f32 %v2147_v11, %v1165_v22  ;;  %v1173_v12 = vrot.slane %v1158_v42, %v2145_v9  ;;  %v1169_v13 = vrot.slane %v1150_v2, %v2145_v9 }
 0x58f   :  { %v1181_v30 = vrot.slane %v1143_v59, %v2145_v9  ;;  %v1160_v19 = vcombine.high %v1150_v2, %v1150_v2  ;;  %v1157_v35 = vrot.slane %v1129_v15, %v2138_v5  ;;  %v1159_v45 = vcombine.high %v1143_v59, %v1143_v59 }
 0x590   :  { %1220 = vadd.xlane.f32.xlu1 %v1203_v62  ;;  %1218 = vadd.xlane.f32.xlu0 %v1202_v34  ;;  %v1207_v3 = vmul.f32 %v2170_v32, %v1173_v12  ;;  %v1204_v29 = vmul.f32 %v2152_v16, %v1169_v13  ;;  %v1205_v0 = vmul.f32 %v2161_v24, %v1169_v13 }
 0x591   :  { %v1211_v10 = vmul.f32 %v2177_v40, %v1181_v30  ;;  %v1177_v31 = vrot.slane %v1160_v19, %v2145_v9  ;;  %v1206_v36 = vmul.f32 %v2163_v26, %v1173_v12  ;;  %v1185_v41 = vrot.slane %v1157_v35, %v2145_v9 }
 0x592   :  { %v1210_v52 = vmul.f32 %v2172_v33, %v1181_v30  ;;  %v1189_v23 = vrot.slane %v1159_v45, %v2145_v9  ;;  %v1161_v39 = vcombine.high %v1157_v35, %v1157_v35 }
 0x593   :  { %v1209_v37 = vmul.f32 %v2185_v47, %v1177_v31  ;;  %v1213_v53 = vmul.f32 %v2192_v54, %v1185_v41  ;;  %v1208_v5 = vmul.f32 %v2181_v43, %v1177_v31  ;;  %v1212_v46 = vmul.f32 %v2189_v50, %v1185_v41 }
 0x594   :  { %1228 = vadd.xlane.f32.xlu1 %v1207_v3  ;;  %1222 = vadd.xlane.f32.xlu0 %v1204_v29  ;;  %v1215_v38 = vmul.f32 %v2199_v61, %v1189_v23  ;;  %v1193_v7 = vrot.slane %v1161_v39, %v2145_v9  ;;  %v1214_v44 = vmul.f32 %v2196_v57, %v1189_v23 }
 0x596   :  { %v1217_v56 = vmul.f32 %v2206_v4, %v1193_v7  ;;  %v1216_v48 = vmul.f32 %v2203_v1, %v1193_v7 }
 0x598   :  { %1224 = vadd.xlane.f32.xlu0 %v1205_v0  ;;  %1236 = vadd.xlane.f32.xlu1 %v1211_v10 }
 0x59c   :  { %1226 = vadd.xlane.f32.xlu0 %v1206_v36  ;;  %1232 = vadd.xlane.f32.xlu1 %v1209_v37 }
 0x5a0   :  { %1234 = vadd.xlane.f32.xlu0 %v1210_v52  ;;  %1240 = vadd.xlane.f32.xlu1 %v1213_v53 }
 0x5a4   :  { %1230 = vadd.xlane.f32.xlu0 %v1208_v5  ;;  %1244 = vadd.xlane.f32.xlu1 %v1215_v38 }
 0x5a8   :  { %1238 = vadd.xlane.f32.xlu0 %v1212_v46  ;;  %1248 = vadd.xlane.f32.xlu1 %v1217_v56 }
 0x5ac   :  { %1242 = vadd.xlane.f32.xlu0 %v1214_v44 }
 0x5b0   :  { %1246 = vadd.xlane.f32.xlu0 %v1216_v48 }
 0x61d   :  { %v1221_v8 = vpop.xlane.xlu1 %1220  ;;  %v1219_v14 = vpop.xlane.xlu0 %1218 }
 0x61e   :  { %v1273_v3 = vrot.slane %v1221_v8, %v2219_v27  ;;  %v1269_v29 = vrot.slane %v1219_v14, %v2216_v25 }
 0x620   :  { %v1274_v41 = vsel %vm291_vm0, %v1273_v3, %v1269_v29 }
 0x621   :  { %v1229_v20 = vpop.xlane.xlu1 %1228  ;;  %v1223_v21 = vpop.xlane.xlu0 %1222 }
 0x622   :  { %v1278_v30 = vrot.slane %v1223_v21, %v2216_v25  ;;  %v1291_v0 = vrot.slane %v1229_v20, %v2219_v27 }
 0x625   :  { %v1225_v22 = vpop.xlane.xlu0 %1224  ;;  %v1237_v42 = vpop.xlane.xlu1 %1236 }
 0x626   :  { %v1282_v13 = vrot.slane %v1225_v22, %v2219_v27  ;;  %v1309_v46 = vrot.slane %v1237_v42, %v2219_v27 }
 0x628   :  { %v1283_v35 = vsel %vm291_vm0, %v1282_v13, %v1278_v30 }
 0x629   :  { %v1227_v2 = vpop.xlane.xlu0 %1226  ;;  %v1233_v59 = vpop.xlane.xlu1 %1232  ;;  %v1338_v53 = vsel %vm356_vm1, %v1283_v35, %v1274_v41 }
 0x62a   :  { %v1287_v15 = vrot.slane %v1227_v2, %v2216_v25  ;;  %v1300_v36 = vrot.slane %v1233_v59, %v2219_v27 }
 0x62c   :  { %v1292_v37 = vsel %vm291_vm0, %v1291_v0, %v1287_v15 }
 0x62d   :  { %v1235_v62 = vpop.xlane.xlu0 %1234  ;;  %v1241_v34 = vpop.xlane.xlu1 %1240  ;;  %v1339_v5 = vsel %vm358_vm2, %v1292_v37, %v1338_v53 }
 0x62e   :  { %v1305_v23 = vrot.slane %v1235_v62, %v2216_v25  ;;  %v1318_v38 = vrot.slane %v1241_v34, %v2219_v27 }
 0x630   :  { %v1310_v14 = vsel %vm291_vm0, %v1309_v46, %v1305_v23  ;;  %v1890_v23 = vld [vmem:[#allocation9] sm:$0xff]  }
 0x631   :  { %v1231_v12 = vpop.xlane.xlu0 %1230  ;;  %v1245_v10 = vpop.xlane.xlu1 %1244  ;;  %1852 = vmatpush3.bf16.msra.mxu1 %v1890_v23 }
 0x632   :  { %v1296_v19 = vrot.slane %v1231_v12, %v2216_v25  ;;  %v1327_v44 = vrot.slane %v1245_v10, %v2219_v27  ;;  %1853 = vmatprep.subr.bf16.mxu1 %v2035_v28 }
 0x634   :  { %v1301_v45 = vsel %vm291_vm0, %v1300_v36, %v1296_v19 }
 0x635   :  { %v1239_v31 = vpop.xlane.xlu0 %1238  ;;  %v1340_v56 = vsel %vm360_vm3, %v1301_v45, %v1339_v5  ;;  %v1249_v48 = vpop.xlane.xlu1 %1248  ;;  %v1896_v5 = vld [vmem:[#allocation9 + $0x30] sm:$0xff]  }
 0x636   :  { %v1314_v52 = vrot.slane %v1239_v31, %v2216_v25  ;;  %v1336_v22 = vrot.slane %v1249_v48, %v2219_v27  ;;  %v1341_v59 = vsel %vm362_vm4, %v1310_v14, %v1340_v56 }
 0x638   :  { %v1319_v8 = vsel %vm291_vm0, %v1318_v38, %v1314_v52 }
 0x639   :  { %v1243_v39 = vpop.xlane.xlu0 %1242  ;;  %v1342_v42 = vsel %vm364_vm5, %v1319_v8, %v1341_v59 }
 0x63a   :  { %v1323_v7 = vrot.slane %v1243_v39, %v2216_v25  ;;  %v1891_v39 = vld [vmem:[#allocation9 + $0x8] sm:$0xff]  }
 0x63b   :  { %1854 = vmatpush3.bf16.msra.mxu1 %v1891_v39 }
 0x63c   :  { %v1328_v20 = vsel %vm291_vm0, %v1327_v44, %v1323_v7  ;;  %1855 = vmatprep.subr.bf16.mxu1 %v2035_v28 }
 0x63d   :  { %v1247_v21 = vpop.xlane.xlu0 %1246  ;;  %v1343_v34 = vsel %vm366_vm6, %v1328_v20, %v1342_v42 }
 0x63e   :  { %v1332_v2 = vrot.slane %v1247_v21, %v2216_v25 }
 0x640   :  { %v1337_v62 = vsel %vm291_vm0, %v1336_v22, %v1332_v2 }
 0x641   :  { %v1344_v12 = vsel %vm368_vm7, %v1337_v62, %v1343_v34 }
 0x642   :  { %v1346_v13 = vsel %vm127_vm8, %v1344_v12, -1e+30 }
 0x643   :  { %v1347_v15 = vsel %vm372_vm9, %v1346_v13, -inf }
 0x644   :  { %1348 = vmax.xlane.f32.xlu0 %v1347_v15 }
 0x65d   :  { %v2514_v3 = vpop.f32.mrb[4].mxu0 }
 0x65e   :  { %v1849_v27 = vpop.f32.mrb[5].mxu0 }
 0x65f   :  { %v1572_v25 = vpop.f32.mrb[6].mxu0 }
 0x660   :  { %v1850_v29 = vpop.f32.mrb[7].mxu0 }
 0x6d1   :  { %v1349_v30 = vpop.xlane.xlu0 %1348 }
 0x6d2   :  { %v1350_v19 = vsub.f32 %v1346_v13, %v1349_v30 }
 0x6d4   :  { %v1351_v0 = vmul.f32 1.442695, %v1350_v19 }
 0x6d6   :  { %1906 = vpow2.f32 %v1351_v0 }
 0x6e0   :  { %v1907_v10 = vpop.eup %1906 }
 0x6e1   :  { %v1353_v31 = vsel %vm372_vm9, %v1907_v10, 0.0 }
 0x6e2   :  { %1354 = vadd.xlane.f32.xlu1 %v1353_v31 }
 0x76f   :  { %v1355_v35 = vpop.xlane.xlu1 %1354 }
 0x770   :  { %1908 = vrcp.f32 %v1355_v35 }
 0x77a   :  { %v1909_v18 = vpop.eup %1908 }
 0x77b   :  { %v1357_v36 = vmul.f32 %v1909_v18, %v1907_v10 }
 0x77d   :  { %v1361_v37 = vrot.slane %v1357_v36, %v2145_v9  ;;  %v1372_v41 = vrot.slane %v1357_v36, %v2296_v49  ;;  %v1383_v45 = vrot.slane %v1357_v36, %v2299_v51  ;;  %v1394_v52 = vrot.slane %v1357_v36, %v2304_v55  ;;  %v1892_v51 = vld [vmem:[#allocation9 + $0x10] sm:$0xff]  }
 0x77e   :  { %v1405_v53 = vrot.slane %v1357_v36, %v2308_v58  ;;  %v1416_v9 = vrot.slane %v1357_v36, %v2312_v60  ;;  %v1427_v49 = vrot.slane %v1357_v36, %v2316_v63  ;;  %1856 = vmatpush3.bf16.msra.mxu1 %v1892_v51  ;;  %v1438_v55 = vrot.slane %v1357_v36, %v2320_v6  ;;  %v1893_v58 = vld [vmem:[#allocation9 + $0x18] sm:$0xff]   ;;  %v1894_v60 = vld [vmem:[#allocation9 + $0x20] sm:$0xff]   ;;  %v1895_v63 = vld [vmem:[#allocation9 + $0x28] sm:$0xff]  }
 0x77f   :  { %1367 = vbcast.lane.b32.xlu1 %v1361_v37, 264  ;;  %1363 = vbcast.lane.b32.xlu0 %v1361_v37, 256  ;;  %v1897_v6 = vld [vmem:[#allocation9 + $0x38] sm:$0xff]  }
 0x780   :  { %1857 = vmatprep.subr.bf16.mxu1 %v2035_v28 }
 0x782   :  { %1858 = vmatpush3.bf16.msra.mxu1 %v1893_v58 }
 0x783   :  { %1374 = vbcast.lane.b32.xlu1 %v1372_v41, 256  ;;  %1385 = vbcast.lane.b32.xlu0 %v1383_v45, 256 }
 0x784   :  { %1859 = vmatprep.subr.bf16.mxu1 %v2035_v28 }
 0x786   :  { %1860 = vmatpush3.bf16.msra.mxu1 %v1894_v60 }
 0x787   :  { %1378 = vbcast.lane.b32.xlu1 %v1372_v41, 264  ;;  %1396 = vbcast.lane.b32.xlu0 %v1394_v52, 256 }
 0x788   :  { %1861 = vmatprep.subr.bf16.mxu1 %v2035_v28 }
 0x78a   :  { %1862 = vmatpush3.bf16.msra.mxu1 %v1895_v63 }
 0x78b   :  { %1389 = vbcast.lane.b32.xlu1 %v1383_v45, 264  ;;  %1407 = vbcast.lane.b32.xlu0 %v1405_v53, 256 }
 0x78c   :  { %1863 = vmatprep.subr.bf16.mxu1 %v2035_v28 }
 0x78e   :  { %1864 = vmatpush3.bf16.msra.mxu1 %v1896_v5 }
 0x78f   :  { %1400 = vbcast.lane.b32.xlu1 %v1394_v52, 264  ;;  %1418 = vbcast.lane.b32.xlu0 %v1416_v9, 256 }
 0x790   :  { %1865 = vmatprep.subr.bf16.mxu1 %v2035_v28 }
 0x792   :  { %1866 = vmatpush3.bf16.msra.mxu1 %v1897_v6 }
 0x793   :  { %1411 = vbcast.lane.b32.xlu1 %v1405_v53, 264  ;;  %1429 = vbcast.lane.b32.xlu0 %v1427_v49, 256 }
 0x797   :  { %1422 = vbcast.lane.b32.xlu1 %v1416_v9, 264  ;;  %1440 = vbcast.lane.b32.xlu0 %v1438_v55, 256 }
 0x79b   :  { %1433 = vbcast.lane.b32.xlu1 %v1427_v49, 264 }
 0x79f   :  { %1444 = vbcast.lane.b32.xlu1 %v1438_v55, 264 }
 0x7f1   :  { %v1368_v38 = vpop.permute.xlu1 %1367  ;;  %v1364_v7 = vpop.permute.xlu0 %1363 }
 0x7f2   :  { %v1447_v14 = vmul.f32 %v2154_v17, %v1368_v38  ;;  %v1446_v20 = vmul.f32 %v2147_v11, %v1364_v7 }
 0x7f4   :  { %v1462_v62 = vadd.f32 %v1447_v14, %v1446_v20 }
 0x7f5   :  { %v1375_v46 = vpop.permute.xlu1 %1374  ;;  %v1386_v56 = vpop.permute.xlu0 %1385 }
 0x7f6   :  { %v1448_v2 = vmul.f32 %v2152_v16, %v1375_v46  ;;  %v1450_v28 = vmul.f32 %v2163_v26, %v1386_v56  ;;  %v1463_v11 = vrot.slane %v1462_v62, 4 }
 0x7f8   :  { %v1464_v0 = vadd.f32 %v1463_v11, %v1462_v62 }
 0x7f9   :  { %v1379_v44 = vpop.permute.xlu1 %1378  ;;  %v1397_v48 = vpop.permute.xlu0 %1396 }
 0x7fa   :  { %v1449_v8 = vmul.f32 %v2161_v24, %v1379_v44  ;;  %v1452_v13 = vmul.f32 %v2181_v43, %v1397_v48  ;;  %v1465_v45 = vrot.slane %v1464_v0, 2 }
 0x7fc   :  { %v1469_v42 = vadd.f32 %v1449_v8, %v1448_v2  ;;  %v1466_v60 = vadd.f32 %v1465_v45, %v1464_v0 }
 0x7fd   :  { %v1390_v21 = vpop.permute.xlu1 %1389  ;;  %v1408_v22 = vpop.permute.xlu0 %1407 }
 0x7fe   :  { %v1451_v59 = vmul.f32 %v2170_v32, %v1390_v21  ;;  %v1470_v17 = vrot.slane %v1469_v42, 4  ;;  %v1454_v16 = vmul.f32 %v2172_v33, %v1408_v22  ;;  %v1467_v14 = vrot.slane %v1466_v60, 1 }
 0x800   :  { %v1476_v34 = vadd.f32 %v1451_v59, %v1450_v28  ;;  %v1471_v26 = vadd.f32 %v1470_v17, %v1469_v42 }
 0x801   :  { %v1401_v12 = vpop.permute.xlu1 %1400  ;;  %v1419_v15 = vpop.permute.xlu0 %1418 }
 0x802   :  { %v1453_v24 = vmul.f32 %v2185_v47, %v1401_v12  ;;  %v1477_v25 = vrot.slane %v1476_v34, 4  ;;  %v1456_v47 = vmul.f32 %v2189_v50, %v1419_v15  ;;  %v1472_v37 = vrot.slane %v1471_v26, 2 }
 0x804   :  { %v1483_v27 = vadd.f32 %v1453_v24, %v1452_v13  ;;  %v1478_v10 = vadd.f32 %v1477_v25, %v1476_v34  ;;  %v1473_v55 = vadd.f32 %v1472_v37, %v1471_v26  ;;  %v1468_v34 = vadd.f32 %v1467_v14, %v1466_v60 }
 0x805   :  { %v1412_v29 = vpop.permute.xlu1 %1411  ;;  %v1430_v31 = vpop.permute.xlu0 %1429 }
 0x806   :  { %v1484_v30 = vrot.slane %v1483_v27, 4  ;;  %v1455_v32 = vmul.f32 %v2177_v40, %v1412_v29  ;;  %v1479_v52 = vrot.slane %v1478_v10, 2  ;;  %v1458_v40 = vmul.f32 %v2196_v57, %v1430_v31 }
 0x807   :  { %v1474_v57 = vrot.slane %v1473_v55, 1 }
 0x808   :  { %v1490_v19 = vadd.f32 %v1455_v32, %v1454_v16  ;;  %v1485_v43 = vadd.f32 %v1484_v30, %v1483_v27  ;;  %v1480_v50 = vadd.f32 %v1479_v52, %v1478_v10 }
 0x809   :  { %v1423_v35 = vpop.permute.xlu1 %1422  ;;  %v1441_v51 = vpop.permute.xlu0 %1440  ;;  %v1475_v59 = vadd.f32 %v1474_v57, %v1473_v55 }
 0x80a   :  { %v1491_v18 = vrot.slane %v1490_v19, 4  ;;  %v1457_v36 = vmul.f32 %v2192_v54, %v1423_v35  ;;  %v1486_v23 = vrot.slane %v1485_v43, 2  ;;  %v1460_v6 = vmul.f32 %v2203_v1, %v1441_v51 }
 0x80b   :  { %v1481_v48 = vrot.slane %v1480_v50, 1  ;;  %v1527_v15 = vsel %vm356_vm1, %v1475_v59, %v1468_v34 }
 0x80c   :  { %v1492_v41 = vadd.f32 %v1491_v18, %v1490_v19  ;;  %v1497_v33 = vadd.f32 %v1457_v36, %v1456_v47  ;;  %v1487_v5 = vadd.f32 %v1486_v23, %v1485_v43 }
 0x80d   :  { %v1434_v53 = vpop.permute.xlu1 %1433  ;;  %v1482_v1 = vadd.f32 %v1481_v48, %v1480_v50 }
 0x80e   :  { %v1459_v9 = vmul.f32 %v2199_v61, %v1434_v53  ;;  %v1493_v39 = vrot.slane %v1492_v41, 2  ;;  %v1498_v49 = vrot.slane %v1497_v33, 4  ;;  %v1488_v20 = vrot.slane %v1487_v5, 1 }
 0x80f   :  { %v1528_v11 = vsel %vm358_vm2, %v1482_v1, %v1527_v15 }
 0x810   :  { %v1504_v58 = vadd.f32 %v1459_v9, %v1458_v40  ;;  %v1499_v63 = vadd.f32 %v1498_v49, %v1497_v33  ;;  %v1494_v46 = vadd.f32 %v1493_v39, %v1492_v41  ;;  %v1489_v12 = vadd.f32 %v1488_v20, %v1487_v5 }
 0x811   :  { %v1445_v54 = vpop.permute.xlu1 %1444 }
 0x812   :  { %v1505_v38 = vrot.slane %v1504_v58, 4  ;;  %v1461_v7 = vmul.f32 %v2206_v4, %v1445_v54  ;;  %v1500_v56 = vrot.slane %v1499_v63, 2  ;;  %v1495_v2 = vrot.slane %v1494_v46, 1 }
 0x813   :  { %v1529_v29 = vsel %vm360_vm3, %v1489_v12, %v1528_v11 }
 0x814   :  { %v1506_v44 = vadd.f32 %v1505_v38, %v1504_v58  ;;  %v1511_v61 = vadd.f32 %v1461_v7, %v1460_v6  ;;  %v1501_v8 = vadd.f32 %v1500_v56, %v1499_v63  ;;  %v1496_v24 = vadd.f32 %v1495_v2, %v1494_v46 }
 0x816   :  { %v1507_v21 = vrot.slane %v1506_v44, 2  ;;  %v1512_v22 = vrot.slane %v1511_v61, 4  ;;  %v1502_v28 = vrot.slane %v1501_v8, 1  ;;  %v1530_v30 = vsel %vm362_vm4, %v1496_v24, %v1529_v29 }
 0x818   :  { %v1508_v42 = vadd.f32 %v1507_v21, %v1506_v44  ;;  %v1513_v62 = vadd.f32 %v1512_v22, %v1511_v61  ;;  %v1503_v17 = vadd.f32 %v1502_v28, %v1501_v8 }
 0x81a   :  { %v1509_v4 = vrot.slane %v1508_v42, 1  ;;  %v1514_v13 = vrot.slane %v1513_v62, 2  ;;  %v1531_v32 = vsel %vm364_vm5, %v1503_v17, %v1530_v30 }
 0x81c   :  { %v1515_v27 = vadd.f32 %v1514_v13, %v1513_v62  ;;  %v1510_v25 = vadd.f32 %v1509_v4, %v1508_v42 }
 0x81e   :  { %v1516_v16 = vrot.slane %v1515_v27, 1  ;;  %v1532_v19 = vsel %vm366_vm6, %v1510_v25, %v1531_v32 }
 0x820   :  { %v1517_v26 = vadd.f32 %v1516_v16, %v1515_v27 }
 0x822   :  { %v1533_v0 = vsel %vm368_vm7, %v1517_v26, %v1532_v19 }
 0x823   :  { %v1570_v10 = vadd.f32 %v2514_v3, %v1533_v0 }
 0x825   :  { %v1577_v31 = vpack.c.bf16 %v1570_v10, %v1570_v10 }
 0x827   :  { %1868 = vmatmul.mubr.bf16.vlgmr.msra.gmra.mrb[4].mxu1 %v1577_v31 }
 0x8fa   :  { %v1676_v35 = vpop.f32.mrb[4].mxu1 }
 0x8fb   :  { %1682 = vst [vmem:[#allocation11] sm:$0xff] %v1676_v35  ;;  %v1869_v43 = vpop.f32.mrb[5].mxu1 }
 0x8fc   :  { %v1679_v18 = vpop.f32.mrb[6].mxu1 }
 0x8fd   :  { %2009 = shalt.err (!%p2006_p8)
}
 0x8fe   :  { %s2010_s13 = scalar_lea.hbm %s2572_s4, 128 }
 0x8ff   :  { %p2011_p9 = scmp.ne.s32.totalorder %s2572_s4, %s2010_s13  ;;  %p2014_p10 = scmp.lt.u32.totalorder %s2010_s13, %s2572_s4 }
 0x901   :  { %p2016_p11 = pnand %p2014_p10, %p2011_p9 }
 0x903   :  { %2019 = shalt.err (!%p2016_p11)
}
 0x904   :  { %1692 = dma.vmem_to_hbm [thread:$0]  %s1690_s10, 128, %s2572_s4, [#allocation5]   ;;  %v1870_v3 = vpop.f32.mrb[7].mxu1 }
 0x905   :  { %2026 = dma.done.wait [#allocation5], 128  }
 0x906   :  { %2027 = vsyncadd [#allocation5], 4294967168 }
 0x907   :  { %1696 = vsyncpa [#allocation4], 1 }
 0x908   :  { %1697 = vsyncpa [#allocation7], 1 }
 0x909   :  { %1698 = vsyncpa [#allocation10], 1 }
 0x90a   :  { %1699 = vsyncpa [#allocation5], 1 }

</bundles_post_ra>
